<compile_context>
chip_gen: v6e
topology: v6e:2x2x1
jax: 0.10.0
libtpu: 0.0.40
codegen_flags: <defaults>
</compile_context>

<pallas_src>
import functools

import jax
import jax.numpy as jnp
from jax import lax
from jax.experimental import pallas as pl
from jax.experimental.pallas import tpu as pltpu


def _silu(x):
    return x * jax.nn.sigmoid(x)


def _extra_dw_block_kernel(
    x_ref,                      # (1, Cin, Lf)   Lf = B*H*W (B images on lanes)
    wm1_ref, b1_ref,            # (9, Cin, Lf), (Cin, 1)   -- BN1 folded + border masks
    pw1_ref, b2_ref,            # (Ce, Cin),    (Ce, 1)    -- BN2 scale folded into pw1
    wm2_ref, b3_ref,            # (9, Ce, Lf),  (Ce, 1)    -- BN3 folded + border masks
    pw2_ref, b4_ref,            # (Cout, Ce),   (Cout, 1)  -- BN4 scale folded into pw2
    o_ref,                      # (1, Cout, Lf)
    *, W, Lf, skip):

    x = x_ref[0]                                        # (Cin, Lf) f32

    def dw3x3(h, wm_ref):
        # 3x3 depthwise conv (pad 1, stride 1) on (C, Lf): XLU lane rotations
        # against pre-masked, BN-folded per-tap weight planes.  No selects,
        # no lane broadcasts, no mask construction on the VPU critical path.
        acc = wm_ref[4] * h                             # center tap (dy=1, dx=1)
        for dy in range(3):                             # unrolled taps (LLO co-issue)
            for dx in range(3):
                t = dy * 3 + dx
                if t == 4:
                    continue
                off = (dy - 1) * W + (dx - 1)           # flat neighbor offset
                shifted = pltpu.roll(h, (-off) % Lf, axis=1)   # shifted[p] = h[p+off]
                acc = acc + wm_ref[t] * shifted
        return acc

    # ---- dw conv #1 + BN1(bias) + SiLU ------------------------------------
    h = _silu(dw3x3(x, wm1_ref) + b1_ref[...])                        # (Cin, Lf)

    # ---- 1x1 expansion (MXU, lane-dense (Ce, Lf) result) + BN2 + SiLU -----
    h = _silu(jnp.dot(pw1_ref[...], h,
                      preferred_element_type=jnp.float32) + b2_ref[...])  # (Ce, Lf)

    # ---- dw conv #2 + BN3(bias) + SiLU ------------------------------------
    h = _silu(dw3x3(h, wm2_ref) + b3_ref[...])                        # (Ce, Lf)

    # ---- 1x1 projection (MXU) + BN4 (no activation) -----------------------
    out = jnp.dot(pw2_ref[...], h,
                  preferred_element_type=jnp.float32) + b4_ref[...]   # (Cout, Lf)

    if skip:                                            # static Python bool
        out = out + x

    o_ref[0] = out.astype(o_ref.dtype)


# --------------------------- wrapper-side helpers ----------------------------
def _num_grid_steps(n_images):
    """One grid step per TensorCore: v7x (2 TCs) keeps per-image parallelism,
    v5e/v6e (1 TC) fold the whole batch into a single step (lane axis)."""
    cores = 1
    try:
        dev = jax.devices()[0]
        for attr in ("num_cores", "core_count"):
            v = getattr(dev, attr, None)
            if isinstance(v, int) and v > 0:
                cores = v
                break
    except Exception:
        cores = 1
    g = max(1, min(int(cores), n_images))
    while n_images % g:
        g -= 1
    return g


def _tap_weight_planes(dw, H, W, B):
    """Per-tap, BN-folded, border-masked depthwise weight planes (9, C, B*H*W).

    The mask is per-image (computed from the position within one H*W image and
    tiled B times), so when the kernel's lane rotation wraps across images or
    around the whole folded buffer, those positions are already zeroed.
    """
    L = H * W
    pos = jnp.arange(L, dtype=jnp.int32)
    yy, xx = pos // W, pos % W
    ones = jnp.ones((L,), jnp.bool_)
    y_ok = [yy >= 1, ones, yy <= H - 2]                 # dy = 0, 1, 2
    x_ok = [xx >= 1, ones, xx <= W - 2]                 # dx = 0, 1, 2
    planes = []
    for dy in range(3):
        for dx in range(3):
            t = dy * 3 + dx
            m = jnp.tile((y_ok[dy] & x_ok[dx]).astype(jnp.float32), B)   # (B*L,)
            planes.append(dw[:, t][:, None] * m[None, :])                # (C, B*L)
    return jnp.stack(planes, axis=0)                                     # (9, C, B*L)


def extra_dw_block(x_nchw, folded, *, skip):
    """PyTorch-convention entry point: NCHW in, NCHW out."""
    N, Cin, H, W = x_nchw.shape
    (dw1, b1, pw1, b2, dw2, b3, pw2, b4) = folded
    Cout = pw2.shape[0]
    L = H * W

    G = _num_grid_steps(N)          # grid steps (== TensorCores used)
    B = N // G                      # images folded onto lanes per step
    Lf = B * L

    # Fold B images into the lane axis: (N,C,H,W) -> (G, C, B*L).  Tiny (8 KB)
    # wrapper-side transpose; everything inside the kernel is lane-dense.
    x_flat = x_nchw.reshape(G, B, Cin, L).transpose(0, 2, 1, 3).reshape(G, Cin, Lf)

    # Pre-masked per-tap weight planes (review item: strips ~16 vselects and
    # ~18 lane-broadcasts from the two dw-conv inner loops).
    # TODO(synk): for production-size H*W keep in-kernel masks instead (these
    # planes are L-proportional HBM traffic) and band-tile rows with a 1-row
    # halo + explicit vmem_limit_bytes sized for v7x's 64 MiB VMEM.
    wm1 = _tap_weight_planes(dw1, H, W, B)      # (9, Cin, Lf)
    wm2 = _tap_weight_planes(dw2, H, W, B)      # (9, Ce,  Lf)
    params = (wm1, b1, pw1, b2, wm2, b3, pw2, b4)

    kernel = functools.partial(_extra_dw_block_kernel, W=W, Lf=Lf, skip=skip)

    def _const_spec(p):
        nd = p.ndim
        return pl.BlockSpec(p.shape, lambda g, _nd=nd: (0,) * _nd)

    out_flat = pl.pallas_call(
        kernel,
        out_shape=jax.ShapeDtypeStruct((G, Cout, Lf), jnp.float32),
        grid=(G,),
        in_specs=[pl.BlockSpec((1, Cin, Lf), lambda g: (g, 0, 0))]
                 + [_const_spec(p) for p in params],
        out_specs=pl.BlockSpec((1, Cout, Lf), lambda g: (g, 0, 0)),
        # TODO(synk): on v7x verify in the bundle dump that this grid axis is
        # actually sharded across the 2 TCs; if not, switch to CORE_PARALLEL.
        compiler_params=pltpu.CompilerParams(dimension_semantics=("parallel",)),
    )(x_flat, *params)

    return (out_flat.reshape(G, Cout, B, L)
            .transpose(0, 2, 1, 3)
            .reshape(N, Cout, H, W))


# ---------------------- parameter init / BN folding --------------------------
def init_raw_params(key, cin, cout, expansion_factor=4):
    """Raw module-style params: conv weights + BN (gamma, beta, mean, var)."""
    ce = cin * expansion_factor
    ks = jax.random.split(key, 8)

    def bn_init(k, c):
        k1, k2, k3, k4 = jax.random.split(k, 4)
        gamma = 1.0 + 0.1 * jax.random.normal(k1, (c,), jnp.float32)
        beta = 0.1 * jax.random.normal(k2, (c,), jnp.float32)
        mean = 0.1 * jax.random.normal(k3, (c,), jnp.float32)
        var = jax.nn.softplus(jax.random.normal(k4, (c,), jnp.float32)) + 0.1
        return (gamma, beta, mean, var)

    w_dw1 = 0.2 * jax.random.normal(ks[0], (cin, 3, 3), jnp.float32)   # torch (cin,1,3,3)
    bn1 = bn_init(ks[1], cin)
    w_pw1 = 0.2 * jax.random.normal(ks[2], (ce, cin), jnp.float32)     # torch (ce,cin,1,1)
    bn2 = bn_init(ks[3], ce)
    w_dw2 = 0.2 * jax.random.normal(ks[4], (ce, 3, 3), jnp.float32)
    bn3 = bn_init(ks[5], ce)
    w_pw2 = 0.2 * jax.random.normal(ks[6], (cout, ce), jnp.float32)
    bn4 = bn_init(ks[7], cout)
    return (w_dw1, bn1, w_pw1, bn2, w_dw2, bn3, w_pw2, bn4)


def fold_params(raw, eps=1e-5):
    """Fold inference-mode BN scales into conv weights; keep per-channel biases.
    TODO(synk): training-mode BatchNorm (batch statistics + running-stat
    updates) is not representable in this folded inference kernel."""
    (w_dw1, bn1, w_pw1, bn2, w_dw2, bn3, w_pw2, bn4) = raw

    def fold(g, b, m, v):
        s = g / jnp.sqrt(v + eps)
        return s, b - m * s

    s1, b1 = fold(*bn1)
    s2, b2 = fold(*bn2)
    s3, b3 = fold(*bn3)
    s4, b4 = fold(*bn4)

    cin = w_dw1.shape[0]
    ce = w_dw2.shape[0]
    dw1 = w_dw1.reshape(cin, 9) * s1[:, None]          # (Cin, 9), tap = dy*3+dx
    pw1 = w_pw1 * s2[:, None]                          # (Ce, Cin)
    dw2 = w_dw2.reshape(ce, 9) * s3[:, None]           # (Ce, 9)
    pw2 = w_pw2 * s4[:, None]                          # (Cout, Ce)
    return (dw1, b1[:, None], pw1, b2[:, None], dw2, b3[:, None], pw2, b4[:, None])


# ------------------------- pure-JAX reference (NCHW) -------------------------
def ref_extra_dw_block(x, raw, skip, eps=1e-5):
    (w_dw1, bn1, w_pw1, bn2, w_dw2, bn3, w_pw2, bn4) = raw

    def bn(h, p):
        g, b, m, v = p
        sh = (1, -1, 1, 1)
        return (h - m.reshape(sh)) * (g / jnp.sqrt(v + eps)).reshape(sh) + b.reshape(sh)

    def dwconv(h, w):
        c = h.shape[1]
        return lax.conv_general_dilated(
            h, w.reshape(c, 1, 3, 3), (1, 1), ((1, 1), (1, 1)),
            dimension_numbers=("NCHW", "OIHW", "NCHW"), feature_group_count=c)

    def pwconv(h, w):
        return lax.conv_general_dilated(
            h, w[:, :, None, None], (1, 1), ((0, 0), (0, 0)),
            dimension_numbers=("NCHW", "OIHW", "NCHW"))

    h = _silu(bn(dwconv(x, w_dw1), bn1))
    h = _silu(bn(pwconv(h, w_pw1), bn2))
    h = _silu(bn(dwconv(h, w_dw2), bn3))
    h = bn(pwconv(h, w_pw2), bn4)
    return x + h if skip else h


if __name__ == "__main__":
    # Module config: in_channels=4, out_channels=4, kernel_size=3, stride=1,
    # expansion_factor=4  ->  skip_connection is True.
    N, Cin, H, W = 2, 4, 16, 16
    Cout, expansion = 4, 4
    skip = (Cin == Cout)  # stride == 1

    key = jax.random.PRNGKey(0)
    kx, kp = jax.random.split(key)
    x_nchw = jax.random.normal(kx, (N, Cin, H, W), jnp.float32)

    raw = init_raw_params(kp, Cin, Cout, expansion)
    folded = fold_params(raw)

    out_nchw = jax.block_until_ready(extra_dw_block(x_nchw, folded, skip=skip))

    # Cross-check against pure-JAX/XLA reference built from the RAW (unfolded)
    # parameters, so both the BN folding and the kernel are validated.
    ref_nchw = ref_extra_dw_block(x_nchw, raw, skip)
    assert out_nchw.shape == (N, Cout, H, W)
    max_diff = float(jnp.max(jnp.abs(out_nchw - ref_nchw)))
    assert jnp.allclose(out_nchw, ref_nchw, atol=1e-4, rtol=1e-4), (
        "max abs diff = %g" % max_diff)

    print("KERNEL_OK")
</pallas_src>

<mosaic_0001>
module attributes {stable_mosaic.version = 11 : i64} {
  func.func @_extra_dw_block_kernel(%arg0: i32, %arg1: memref<1x4x512xf32, #tpu.memory_space<vmem>>, %arg2: memref<9x4x512xf32, #tpu.memory_space<vmem>>, %arg3: memref<4x1xf32, #tpu.memory_space<vmem>>, %arg4: memref<16x4xf32, #tpu.memory_space<vmem>>, %arg5: memref<16x1xf32, #tpu.memory_space<vmem>>, %arg6: memref<9x16x512xf32, #tpu.memory_space<vmem>>, %arg7: memref<16x1xf32, #tpu.memory_space<vmem>>, %arg8: memref<4x16xf32, #tpu.memory_space<vmem>>, %arg9: memref<4x1xf32, #tpu.memory_space<vmem>>, %arg10: memref<1x4x512xf32, #tpu.memory_space<vmem>>) attributes {dimension_semantics = [#tpu.dimension_semantics<parallel>], iteration_bounds = array<i64: 1>, scalar_prefetch = 0 : i64, scratch_operands = 0 : i64, tpu.core_type = #tpu.core_type<tc>, window_params = [{transform_indices = @transform_0, window_bounds = array<i64: 1, 4, 512>}, {pipeline_mode = #tpu.pipeline_mode<synchronous>, transform_indices = @transform_1, window_bounds = array<i64: 9, 4, 512>}, {pipeline_mode = #tpu.pipeline_mode<synchronous>, transform_indices = @transform_2, window_bounds = array<i64: 4, 1>}, {pipeline_mode = #tpu.pipeline_mode<synchronous>, transform_indices = @transform_3, window_bounds = array<i64: 16, 4>}, {pipeline_mode = #tpu.pipeline_mode<synchronous>, transform_indices = @transform_4, window_bounds = array<i64: 16, 1>}, {pipeline_mode = #tpu.pipeline_mode<synchronous>, transform_indices = @transform_5, window_bounds = array<i64: 9, 16, 512>}, {pipeline_mode = #tpu.pipeline_mode<synchronous>, transform_indices = @transform_6, window_bounds = array<i64: 16, 1>}, {pipeline_mode = #tpu.pipeline_mode<synchronous>, transform_indices = @transform_7, window_bounds = array<i64: 4, 16>}, {pipeline_mode = #tpu.pipeline_mode<synchronous>, transform_indices = @transform_8, window_bounds = array<i64: 4, 1>}, {transform_indices = @transform_9, window_bounds = array<i64: 1, 4, 512>}]} {
    %c0 = arith.constant 0 : index
    %c0_0 = arith.constant 0 : index
    %c0_1 = arith.constant 0 : index
    %0 = vector.load %arg1[%c0, %c0_0, %c0_1] : memref<1x4x512xf32, #tpu.memory_space<vmem>>, vector<1x4x512xf32>
    %1 = vector.shape_cast %0 : vector<1x4x512xf32> to vector<4x512xf32>
    %c4 = arith.constant 4 : index
    %c0_2 = arith.constant 0 : index
    %c0_3 = arith.constant 0 : index
    %2 = vector.load %arg2[%c4, %c0_2, %c0_3] : memref<9x4x512xf32, #tpu.memory_space<vmem>>, vector<1x4x512xf32>
    %3 = vector.shape_cast %2 : vector<1x4x512xf32> to vector<4x512xf32>
    %4 = arith.mulf %3, %1 : vector<4x512xf32>
    %c17_i32 = arith.constant 17 : i32
    %5 = tpu.dynamic_rotate %1 by %c17_i32 dim 1 : vector<4x512xf32>, i32 -> vector<4x512xf32>
    %c0_4 = arith.constant 0 : index
    %c0_5 = arith.constant 0 : index
    %c0_6 = arith.constant 0 : index
    %6 = vector.load %arg2[%c0_4, %c0_5, %c0_6] : memref<9x4x512xf32, #tpu.memory_space<vmem>>, vector<1x4x512xf32>
    %7 = vector.shape_cast %6 : vector<1x4x512xf32> to vector<4x512xf32>
    %8 = arith.mulf %7, %5 : vector<4x512xf32>
    %9 = arith.addf %4, %8 : vector<4x512xf32>
    %c16_i32 = arith.constant 16 : i32
    %10 = tpu.dynamic_rotate %1 by %c16_i32 dim 1 : vector<4x512xf32>, i32 -> vector<4x512xf32>
    %c1 = arith.constant 1 : index
    %c0_7 = arith.constant 0 : index
    %c0_8 = arith.constant 0 : index
    %11 = vector.load %arg2[%c1, %c0_7, %c0_8] : memref<9x4x512xf32, #tpu.memory_space<vmem>>, vector<1x4x512xf32>
    %12 = vector.shape_cast %11 : vector<1x4x512xf32> to vector<4x512xf32>
    %13 = arith.mulf %12, %10 : vector<4x512xf32>
    %14 = arith.addf %9, %13 : vector<4x512xf32>
    %c15_i32 = arith.constant 15 : i32
    %15 = tpu.dynamic_rotate %1 by %c15_i32 dim 1 : vector<4x512xf32>, i32 -> vector<4x512xf32>
    %c2 = arith.constant 2 : index
    %c0_9 = arith.constant 0 : index
    %c0_10 = arith.constant 0 : index
    %16 = vector.load %arg2[%c2, %c0_9, %c0_10] : memref<9x4x512xf32, #tpu.memory_space<vmem>>, vector<1x4x512xf32>
    %17 = vector.shape_cast %16 : vector<1x4x512xf32> to vector<4x512xf32>
    %18 = arith.mulf %17, %15 : vector<4x512xf32>
    %19 = arith.addf %14, %18 : vector<4x512xf32>
    %c1_i32 = arith.constant 1 : i32
    %20 = tpu.dynamic_rotate %1 by %c1_i32 dim 1 : vector<4x512xf32>, i32 -> vector<4x512xf32>
    %c3 = arith.constant 3 : index
    %c0_11 = arith.constant 0 : index
    %c0_12 = arith.constant 0 : index
    %21 = vector.load %arg2[%c3, %c0_11, %c0_12] : memref<9x4x512xf32, #tpu.memory_space<vmem>>, vector<1x4x512xf32>
    %22 = vector.shape_cast %21 : vector<1x4x512xf32> to vector<4x512xf32>
    %23 = arith.mulf %22, %20 : vector<4x512xf32>
    %24 = arith.addf %19, %23 : vector<4x512xf32>
    %c511_i32 = arith.constant 511 : i32
    %25 = tpu.dynamic_rotate %1 by %c511_i32 dim 1 : vector<4x512xf32>, i32 -> vector<4x512xf32>
    %c5 = arith.constant 5 : index
    %c0_13 = arith.constant 0 : index
    %c0_14 = arith.constant 0 : index
    %26 = vector.load %arg2[%c5, %c0_13, %c0_14] : memref<9x4x512xf32, #tpu.memory_space<vmem>>, vector<1x4x512xf32>
    %27 = vector.shape_cast %26 : vector<1x4x512xf32> to vector<4x512xf32>
    %28 = arith.mulf %27, %25 : vector<4x512xf32>
    %29 = arith.addf %24, %28 : vector<4x512xf32>
    %c497_i32 = arith.constant 497 : i32
    %30 = tpu.dynamic_rotate %1 by %c497_i32 dim 1 : vector<4x512xf32>, i32 -> vector<4x512xf32>
    %c6 = arith.constant 6 : index
    %c0_15 = arith.constant 0 : index
    %c0_16 = arith.constant 0 : index
    %31 = vector.load %arg2[%c6, %c0_15, %c0_16] : memref<9x4x512xf32, #tpu.memory_space<vmem>>, vector<1x4x512xf32>
    %32 = vector.shape_cast %31 : vector<1x4x512xf32> to vector<4x512xf32>
    %33 = arith.mulf %32, %30 : vector<4x512xf32>
    %34 = arith.addf %29, %33 : vector<4x512xf32>
    %c496_i32 = arith.constant 496 : i32
    %35 = tpu.dynamic_rotate %1 by %c496_i32 dim 1 : vector<4x512xf32>, i32 -> vector<4x512xf32>
    %c7 = arith.constant 7 : index
    %c0_17 = arith.constant 0 : index
    %c0_18 = arith.constant 0 : index
    %36 = vector.load %arg2[%c7, %c0_17, %c0_18] : memref<9x4x512xf32, #tpu.memory_space<vmem>>, vector<1x4x512xf32>
    %37 = vector.shape_cast %36 : vector<1x4x512xf32> to vector<4x512xf32>
    %38 = arith.mulf %37, %35 : vector<4x512xf32>
    %39 = arith.addf %34, %38 : vector<4x512xf32>
    %c495_i32 = arith.constant 495 : i32
    %40 = tpu.dynamic_rotate %1 by %c495_i32 dim 1 : vector<4x512xf32>, i32 -> vector<4x512xf32>
    %c8 = arith.constant 8 : index
    %c0_19 = arith.constant 0 : index
    %c0_20 = arith.constant 0 : index
    %41 = vector.load %arg2[%c8, %c0_19, %c0_20] : memref<9x4x512xf32, #tpu.memory_space<vmem>>, vector<1x4x512xf32>
    %42 = vector.shape_cast %41 : vector<1x4x512xf32> to vector<4x512xf32>
    %43 = arith.mulf %42, %40 : vector<4x512xf32>
    %44 = arith.addf %39, %43 : vector<4x512xf32>
    %c0_21 = arith.constant 0 : index
    %c0_22 = arith.constant 0 : index
    %45 = vector.load %arg3[%c0_21, %c0_22] : memref<4x1xf32, #tpu.memory_space<vmem>>, vector<4x1xf32>
    %46 = vector.broadcast %45 : vector<4x1xf32> to vector<4x512xf32>
    %47 = arith.addf %44, %46 : vector<4x512xf32>
    %48 = arith.negf %47 : vector<4x512xf32>
    %49 = math.exp %48 : vector<4x512xf32>
    %cst = arith.constant 1.000000e+00 : f32
    %50 = vector.broadcast %cst : f32 to vector<4x512xf32>
    %51 = arith.addf %50, %49 : vector<4x512xf32>
    %52 = arith.divf %50, %51 : vector<4x512xf32>
    %53 = arith.mulf %47, %52 : vector<4x512xf32>
    %c0_23 = arith.constant 0 : index
    %c0_24 = arith.constant 0 : index
    %54 = vector.load %arg4[%c0_23, %c0_24] : memref<16x4xf32, #tpu.memory_space<vmem>>, vector<16x4xf32>
    %cst_25 = arith.constant dense<0.000000e+00> : vector<16x512xf32>
    %55 = tpu.matmul %54, %53, %cst_25 {dimension_numbers = #tpu.dot_dimension_numbers<[1], [0], [0], [1], [0, 0, 1, 1], [], []>} : vector<16x4xf32>, vector<4x512xf32>, vector<16x512xf32> -> vector<16x512xf32>
    %c0_26 = arith.constant 0 : index
    %c0_27 = arith.constant 0 : index
    %56 = vector.load %arg5[%c0_26, %c0_27] : memref<16x1xf32, #tpu.memory_space<vmem>>, vector<16x1xf32>
    %57 = vector.broadcast %56 : vector<16x1xf32> to vector<16x512xf32>
    %58 = arith.addf %55, %57 : vector<16x512xf32>
    %59 = arith.negf %58 : vector<16x512xf32>
    %60 = math.exp %59 : vector<16x512xf32>
    %cst_28 = arith.constant 1.000000e+00 : f32
    %61 = vector.broadcast %cst_28 : f32 to vector<16x512xf32>
    %62 = arith.addf %61, %60 : vector<16x512xf32>
    %63 = arith.divf %61, %62 : vector<16x512xf32>
    %64 = arith.mulf %58, %63 : vector<16x512xf32>
    %c4_29 = arith.constant 4 : index
    %c0_30 = arith.constant 0 : index
    %c0_31 = arith.constant 0 : index
    %65 = vector.load %arg6[%c4_29, %c0_30, %c0_31] : memref<9x16x512xf32, #tpu.memory_space<vmem>>, vector<1x16x512xf32>
    %66 = vector.shape_cast %65 : vector<1x16x512xf32> to vector<16x512xf32>
    %67 = arith.mulf %66, %64 : vector<16x512xf32>
    %c17_i32_32 = arith.constant 17 : i32
    %68 = tpu.dynamic_rotate %64 by %c17_i32_32 dim 1 : vector<16x512xf32>, i32 -> vector<16x512xf32>
    %c0_33 = arith.constant 0 : index
    %c0_34 = arith.constant 0 : index
    %c0_35 = arith.constant 0 : index
    %69 = vector.load %arg6[%c0_33, %c0_34, %c0_35] : memref<9x16x512xf32, #tpu.memory_space<vmem>>, vector<1x16x512xf32>
    %70 = vector.shape_cast %69 : vector<1x16x512xf32> to vector<16x512xf32>
    %71 = arith.mulf %70, %68 : vector<16x512xf32>
    %72 = arith.addf %67, %71 : vector<16x512xf32>
    %c16_i32_36 = arith.constant 16 : i32
    %73 = tpu.dynamic_rotate %64 by %c16_i32_36 dim 1 : vector<16x512xf32>, i32 -> vector<16x512xf32>
    %c1_37 = arith.constant 1 : index
    %c0_38 = arith.constant 0 : index
    %c0_39 = arith.constant 0 : index
    %74 = vector.load %arg6[%c1_37, %c0_38, %c0_39] : memref<9x16x512xf32, #tpu.memory_space<vmem>>, vector<1x16x512xf32>
    %75 = vector.shape_cast %74 : vector<1x16x512xf32> to vector<16x512xf32>
    %76 = arith.mulf %75, %73 : vector<16x512xf32>
    %77 = arith.addf %72, %76 : vector<16x512xf32>
    %c15_i32_40 = arith.constant 15 : i32
    %78 = tpu.dynamic_rotate %64 by %c15_i32_40 dim 1 : vector<16x512xf32>, i32 -> vector<16x512xf32>
    %c2_41 = arith.constant 2 : index
    %c0_42 = arith.constant 0 : index
    %c0_43 = arith.constant 0 : index
    %79 = vector.load %arg6[%c2_41, %c0_42, %c0_43] : memref<9x16x512xf32, #tpu.memory_space<vmem>>, vector<1x16x512xf32>
    %80 = vector.shape_cast %79 : vector<1x16x512xf32> to vector<16x512xf32>
    %81 = arith.mulf %80, %78 : vector<16x512xf32>
    %82 = arith.addf %77, %81 : vector<16x512xf32>
    %c1_i32_44 = arith.constant 1 : i32
    %83 = tpu.dynamic_rotate %64 by %c1_i32_44 dim 1 : vector<16x512xf32>, i32 -> vector<16x512xf32>
    %c3_45 = arith.constant 3 : index
    %c0_46 = arith.constant 0 : index
    %c0_47 = arith.constant 0 : index
    %84 = vector.load %arg6[%c3_45, %c0_46, %c0_47] : memref<9x16x512xf32, #tpu.memory_space<vmem>>, vector<1x16x512xf32>
    %85 = vector.shape_cast %84 : vector<1x16x512xf32> to vector<16x512xf32>
    %86 = arith.mulf %85, %83 : vector<16x512xf32>
    %87 = arith.addf %82, %86 : vector<16x512xf32>
    %c511_i32_48 = arith.constant 511 : i32
    %88 = tpu.dynamic_rotate %64 by %c511_i32_48 dim 1 : vector<16x512xf32>, i32 -> vector<16x512xf32>
    %c5_49 = arith.constant 5 : index
    %c0_50 = arith.constant 0 : index
    %c0_51 = arith.constant 0 : index
    %89 = vector.load %arg6[%c5_49, %c0_50, %c0_51] : memref<9x16x512xf32, #tpu.memory_space<vmem>>, vector<1x16x512xf32>
    %90 = vector.shape_cast %89 : vector<1x16x512xf32> to vector<16x512xf32>
    %91 = arith.mulf %90, %88 : vector<16x512xf32>
    %92 = arith.addf %87, %91 : vector<16x512xf32>
    %c497_i32_52 = arith.constant 497 : i32
    %93 = tpu.dynamic_rotate %64 by %c497_i32_52 dim 1 : vector<16x512xf32>, i32 -> vector<16x512xf32>
    %c6_53 = arith.constant 6 : index
    %c0_54 = arith.constant 0 : index
    %c0_55 = arith.constant 0 : index
    %94 = vector.load %arg6[%c6_53, %c0_54, %c0_55] : memref<9x16x512xf32, #tpu.memory_space<vmem>>, vector<1x16x512xf32>
    %95 = vector.shape_cast %94 : vector<1x16x512xf32> to vector<16x512xf32>
    %96 = arith.mulf %95, %93 : vector<16x512xf32>
    %97 = arith.addf %92, %96 : vector<16x512xf32>
    %c496_i32_56 = arith.constant 496 : i32
    %98 = tpu.dynamic_rotate %64 by %c496_i32_56 dim 1 : vector<16x512xf32>, i32 -> vector<16x512xf32>
    %c7_57 = arith.constant 7 : index
    %c0_58 = arith.constant 0 : index
    %c0_59 = arith.constant 0 : index
    %99 = vector.load %arg6[%c7_57, %c0_58, %c0_59] : memref<9x16x512xf32, #tpu.memory_space<vmem>>, vector<1x16x512xf32>
    %100 = vector.shape_cast %99 : vector<1x16x512xf32> to vector<16x512xf32>
    %101 = arith.mulf %100, %98 : vector<16x512xf32>
    %102 = arith.addf %97, %101 : vector<16x512xf32>
    %c495_i32_60 = arith.constant 495 : i32
    %103 = tpu.dynamic_rotate %64 by %c495_i32_60 dim 1 : vector<16x512xf32>, i32 -> vector<16x512xf32>
    %c8_61 = arith.constant 8 : index
    %c0_62 = arith.constant 0 : index
    %c0_63 = arith.constant 0 : index
    %104 = vector.load %arg6[%c8_61, %c0_62, %c0_63] : memref<9x16x512xf32, #tpu.memory_space<vmem>>, vector<1x16x512xf32>
    %105 = vector.shape_cast %104 : vector<1x16x512xf32> to vector<16x512xf32>
    %106 = arith.mulf %105, %103 : vector<16x512xf32>
    %107 = arith.addf %102, %106 : vector<16x512xf32>
    %c0_64 = arith.constant 0 : index
    %c0_65 = arith.constant 0 : index
    %108 = vector.load %arg7[%c0_64, %c0_65] : memref<16x1xf32, #tpu.memory_space<vmem>>, vector<16x1xf32>
    %109 = vector.broadcast %108 : vector<16x1xf32> to vector<16x512xf32>
    %110 = arith.addf %107, %109 : vector<16x512xf32>
    %111 = arith.negf %110 : vector<16x512xf32>
    %112 = math.exp %111 : vector<16x512xf32>
    %cst_66 = arith.constant 1.000000e+00 : f32
    %113 = vector.broadcast %cst_66 : f32 to vector<16x512xf32>
    %114 = arith.addf %113, %112 : vector<16x512xf32>
    %115 = arith.divf %113, %114 : vector<16x512xf32>
    %116 = arith.mulf %110, %115 : vector<16x512xf32>
    %c0_67 = arith.constant 0 : index
    %c0_68 = arith.constant 0 : index
    %117 = vector.load %arg8[%c0_67, %c0_68] : memref<4x16xf32, #tpu.memory_space<vmem>>, vector<4x16xf32>
    %cst_69 = arith.constant dense<0.000000e+00> : vector<4x512xf32>
    %118 = tpu.matmul %117, %116, %cst_69 {dimension_numbers = #tpu.dot_dimension_numbers<[1], [0], [0], [1], [0, 0, 1, 1], [], []>} : vector<4x16xf32>, vector<16x512xf32>, vector<4x512xf32> -> vector<4x512xf32>
    %c0_70 = arith.constant 0 : index
    %c0_71 = arith.constant 0 : index
    %119 = vector.load %arg9[%c0_70, %c0_71] : memref<4x1xf32, #tpu.memory_space<vmem>>, vector<4x1xf32>
    %120 = vector.broadcast %119 : vector<4x1xf32> to vector<4x512xf32>
    %121 = arith.addf %118, %120 : vector<4x512xf32>
    %122 = arith.addf %121, %1 : vector<4x512xf32>
    %c0_72 = arith.constant 0 : index
    %c0_73 = arith.constant 0 : index
    %c0_74 = arith.constant 0 : index
    %123 = vector.load %arg10[%c0_72, %c0_73, %c0_74] : memref<1x4x512xf32, #tpu.memory_space<vmem>>, vector<1x4x512xf32>
    %124 = vector.shape_cast %123 : vector<1x4x512xf32> to vector<4x512xf32>
    %125 = vector.shape_cast %122 : vector<4x512xf32> to vector<1x4x512xf32>
    tpu.vector_store %arg10[%c0_72, %c0_73, %c0_74], %125 {strides = array<i32>} : memref<1x4x512xf32, #tpu.memory_space<vmem>>, vector<1x4x512xf32>,
    return
  }
  func.func @transform_0(%arg0: i32) -> (i32, i32, i32) {
    %c0_i32 = arith.constant 0 : i32
    %c0_i32_0 = arith.constant 0 : i32
    %c0_i32_1 = arith.constant 0 : i32
    return %arg0, %c0_i32, %c0_i32_0 : i32, i32, i32
  }
  func.func @transform_1(%arg0: i32) -> (i32, i32, i32) {
    %c0_i32 = arith.constant 0 : i32
    %c0_i32_0 = arith.constant 0 : i32
    %c0_i32_1 = arith.constant 0 : i32
    %c0_i32_2 = arith.constant 0 : i32
    return %c0_i32, %c0_i32_0, %c0_i32_1 : i32, i32, i32
  }
  func.func @transform_2(%arg0: i32) -> (i32, i32) {
    %c0_i32 = arith.constant 0 : i32
    %c0_i32_0 = arith.constant 0 : i32
    %c0_i32_1 = arith.constant 0 : i32
    return %c0_i32, %c0_i32_0 : i32, i32
  }
  func.func @transform_3(%arg0: i32) -> (i32, i32) {
    %c0_i32 = arith.constant 0 : i32
    %c0_i32_0 = arith.constant 0 : i32
    %c0_i32_1 = arith.constant 0 : i32
    return %c0_i32, %c0_i32_0 : i32, i32
  }
  func.func @transform_4(%arg0: i32) -> (i32, i32) {
    %c0_i32 = arith.constant 0 : i32
    %c0_i32_0 = arith.constant 0 : i32
    %c0_i32_1 = arith.constant 0 : i32
    return %c0_i32, %c0_i32_0 : i32, i32
  }
  func.func @transform_5(%arg0: i32) -> (i32, i32, i32) {
    %c0_i32 = arith.constant 0 : i32
    %c0_i32_0 = arith.constant 0 : i32
    %c0_i32_1 = arith.constant 0 : i32
    %c0_i32_2 = arith.constant 0 : i32
    return %c0_i32, %c0_i32_0, %c0_i32_1 : i32, i32, i32
  }
  func.func @transform_6(%arg0: i32) -> (i32, i32) {
    %c0_i32 = arith.constant 0 : i32
    %c0_i32_0 = arith.constant 0 : i32
    %c0_i32_1 = arith.constant 0 : i32
    return %c0_i32, %c0_i32_0 : i32, i32
  }
  func.func @transform_7(%arg0: i32) -> (i32, i32) {
    %c0_i32 = arith.constant 0 : i32
    %c0_i32_0 = arith.constant 0 : i32
    %c0_i32_1 = arith.constant 0 : i32
    return %c0_i32, %c0_i32_0 : i32, i32
  }
  func.func @transform_8(%arg0: i32) -> (i32, i32) {
    %c0_i32 = arith.constant 0 : i32
    %c0_i32_0 = arith.constant 0 : i32
    %c0_i32_1 = arith.constant 0 : i32
    return %c0_i32, %c0_i32_0 : i32, i32
  }
  func.func @transform_9(%arg0: i32) -> (i32, i32, i32) {
    %c0_i32 = arith.constant 0 : i32
    %c0_i32_0 = arith.constant 0 : i32
    %c0_i32_1 = arith.constant 0 : i32
    return %arg0, %c0_i32, %c0_i32_0 : i32, i32, i32
  }
}

</mosaic_0001>

<bundles_post_ra>
// kernel: tpu_custom_call.1
= control target key start
LH: loop header
LB: loop body
LE: loop exit
PB: predicated region body
PF: predicated region fallthrough
CT: control target
= control target key end

     0   :  { %14 = vsyncpa [#allocation3], 0  ;;  %s2097_s0 = inlined_call_operand.vmem [shape: f32[1,4,512], index: 0, kind: input, shape index: {}]   ;;  %s2098_s1 = inlined_call_operand.hbm [shape: f32[9,4,512], index: 1, kind: input, shape index: {}]   ;;  %s2099_s2 = inlined_call_operand.vmem [shape: f32[4,1], index: 2, kind: input, shape index: {}]   ;;  %s2100_s3 = inlined_call_operand.vmem [shape: f32[16,4], index: 3, kind: input, shape index: {}]   ;;  %s2101_s4 = inlined_call_operand.vmem [shape: f32[16,1], index: 4, kind: input, shape index: {}]   ;;  %s2102_s5 = inlined_call_operand.hbm [shape: f32[9,16,512], index: 5, kind: input, shape index: {}]   ;;  %s2103_s6 = inlined_call_operand.vmem [shape: f32[16,1], index: 6, kind: input, shape index: {}]   ;;  %s2104_s7 = inlined_call_operand.vmem [shape: f32[4,16], index: 7, kind: input, shape index: {}]   ;;  %s2105_s8 = inlined_call_operand.vmem [shape: f32[4,1], index: 8, kind: input, shape index: {}]   ;;  %s2106_s9 = inlined_call_operand.hbm [shape: f32[1,4,512], index: 9, kind: output, shape index: {}]  }
   0x1   :  { %15 = vsyncpa [#allocation6], 0 }
   0x2   :  { %16 = vsyncpa [#allocation4], 0  ;;  %s1428_s30 = smov [#allocation2]  }
   0x3   :  { %s24_s10 = sshll.u32 %s1428_s30, 4  ;;  %s25_s10 = int_to_ptr.vmem [resolvable:$true] %s24_s10 }
   0x4   :  { %s1370_s11 = scalar_lea.vmem %s25_s10, 2304  ;;  %p1375_p1 = scmp.lt.s32.totalorder %s25_s10, %s25_s10 }
   0x5   :  { %p1371_p0 = scmp.ne.s32.totalorder %s25_s10, %s1370_s11  ;;  %p1376_p2 = scmp.lt.s32.totalorder %s1370_s11, %s1370_s11 }
   0x7   :  { %p1377_p3 = por %p1376_p2, %p1375_p1 }
   0x9   :  { %p1378_p4 = pnand %p1377_p3, %p1371_p0 }
   0xb   :  { %1381 = shalt.err (!%p1378_p4)
}
   0xc   :  { %s1429_s12 = smov 256   ;;  %s1430_s13 = smov 16  }
   0xd   :  { %30 = dma.hbm_to_vmem [thread:$0]  %s2098_s1, 2304, %s25_s10, [#allocation3], %s1429_s12, %s1429_s12, %s1430_s13  }
   0xe   :  { %s1431_s16 = smov [#allocation5]  }
   0xf   :  { %s42_s17 = sshll.u32 %s1431_s16, 4  ;;  %s43_s17 = int_to_ptr.vmem [resolvable:$true] %s42_s17 }
  0x10   :  { %s1390_s18 = scalar_lea.vmem %s43_s17, 9216  ;;  %p1395_p6 = scmp.lt.s32.totalorder %s43_s17, %s43_s17 }
  0x11   :  { %p1391_p5 = scmp.ne.s32.totalorder %s43_s17, %s1390_s18  ;;  %p1396_p7 = scmp.lt.s32.totalorder %s1390_s18, %s1390_s18 }
  0x13   :  { %p1397_p8 = por %p1396_p7, %p1395_p6 }
  0x15   :  { %p1398_p9 = pnand %p1397_p8, %p1391_p5 }
  0x17   :  { %1401 = shalt.err (!%p1398_p9)
}
  0x18   :  { %s1432_s19 = smov 512   ;;  %s1433_s20 = smov 32  }
  0x19   :  { %48 = dma.hbm_to_vmem [thread:$0]  %s2102_s5, 9216, %s43_s17, [#allocation6], %s1432_s19, %s1432_s19, %s1433_s20  }
  0x1a   :  { %1422 = dma.done.wait [#allocation3], 2304  }
  0x1b   :  { %1423 = vsyncadd [#allocation3], 4294964992 }
  0x1c   :  { %1424 = dma.done.wait [#allocation6], 9216  }
  0x1d   :  { %1425 = vsyncadd [#allocation6], 4294958080  ;;  %v1434_v0 = vmov 0   ;;  %v1505_v1 = vld [vmem:[%s2097_s0 + $0x8] sm:$0xff]  ;;  %v1510_v2 = vld [vmem:[%s2097_s0] sm:$0xff]  ;;  %s1435_s26 = smov 17   ;;  %v82_v28 = vlaneseq }
  0x1e   :  { %1284 = vset.pattern.permute.xlu0 %v1434_v0  ;;  %1285 = vset.pattern.permute.xlu1 %v1434_v0  ;;  %v1518_v3 = vcombine.high %v1505_v1, %v1505_v1  ;;  %v1526_v4 = vcombine.high %v1510_v2, %v1510_v2  ;;  %s1436_s5 = smov 15   ;;  %s1437_s27 = smov 1   ;;  %v299_v5 = vld [vmem:[%s2099_s2] sm:$0xf]  ;;  %v981_v6 = vld [vmem:[%s2103_s6 + $0x8] sm:$0xff]  ;;  %v1442_v7 = vmov 0.0  }
  0x1f   :  { %78 = vrot.lane.b32.xlu1 %v1505_v1, %s1435_s26  ;;  %74 = vrot.lane.b32.xlu0 %v1510_v2, %s1435_s26  ;;  %s1438_s28 = smov 127   ;;  %s1439_s29 = smov 113   ;;  %v331_v8 = vld [vmem:[%s2101_s4 + $0x8] sm:$0xff]  ;;  %v330_v9 = vld [vmem:[%s2101_s4] sm:$0xff]  ;;  %v1606_v31 = vand.u32 127, %v82_v28  ;;  %v117_v56 = vld [vmem:[#allocation2 + $0x10] sm:$0xff] }
  0x20   :  { %s1440_s30 = smov 112   ;;  %s1441_s10 = smov 111   ;;  %426 = vmatprep.mubr.f32.mxu0 %v1442_v7  ;;  %503 = vmatprep.mubr.f32.mxu1 %v1442_v7  ;;  %v64_v39 = vld [vmem:[#allocation2 + $0x40] sm:$0xff]  ;;  %v65_v40 = vld [vmem:[#allocation2 + $0x48] sm:$0xff]  ;;  %v118_v57 = vld [vmem:[#allocation2 + $0x18] sm:$0xff]  ;;  %vm353_vm8 = vcmask 1043456  }
  0x21   :  { %vm84_vm0 = vcmp.lt.s32.totalorder %v1606_v31, 17  ;;  %vm111_vm1 = vcmp.lt.s32.totalorder %v1606_v31, 16  ;;  %v67_v50 = vmul.f32 %v65_v40, %v1505_v1  ;;  %v89_v51 = vld [vmem:[#allocation2] sm:$0xff]  ;;  %v90_v52 = vld [vmem:[#allocation2 + $0x8] sm:$0xff]  ;;  %v66_v53 = vmul.f32 %v64_v39, %v1510_v2 }
  0x22   :  { %vm139_vm2 = vcmp.lt.s32.totalorder %v1606_v31, 15  ;;  %vm167_vm3 = vcmp.lt.s32.totalorder %v1606_v31, 1  ;;  %vm195_vm4 = vcmp.lt.s32.totalorder %v1606_v31, 127  ;;  %vm223_vm5 = vcmp.lt.s32.totalorder %v1606_v31, 113 }
  0x23   :  { %80 = vrot.lane.b32.xlu1 %v1518_v3, %s1435_s26  ;;  %103 = vrot.lane.b32.xlu0 %v1510_v2, %s1430_s13  ;;  %vm251_vm6 = vcmp.lt.s32.totalorder %v1606_v31, 112  ;;  %vm279_vm7 = vcmp.lt.s32.totalorder %v1606_v31, 111  ;;  %vm346_vm9 = vcmask 31744   ;;  %vm1063_vm10 = vcmask 130048  }
  0x27   :  { %105 = vrot.lane.b32.xlu1 %v1526_v4, %s1430_s13  ;;  %76 = vrot.lane.b32.xlu0 %v1526_v4, %s1435_s26 }
  0x2b   :  { %109 = vrot.lane.b32.xlu1 %v1518_v3, %s1430_s13  ;;  %107 = vrot.lane.b32.xlu0 %v1505_v1, %s1430_s13 }
  0x2f   :  { %133 = vrot.lane.b32.xlu1 %v1526_v4, %s1436_s5  ;;  %131 = vrot.lane.b32.xlu0 %v1510_v2, %s1436_s5 }
  0x33   :  { %137 = vrot.lane.b32.xlu1 %v1518_v3, %s1436_s5  ;;  %135 = vrot.lane.b32.xlu0 %v1505_v1, %s1436_s5 }
  0x37   :  { %161 = vrot.lane.b32.xlu1 %v1526_v4, %s1437_s27  ;;  %159 = vrot.lane.b32.xlu0 %v1510_v2, %s1437_s27 }
  0x3b   :  { %165 = vrot.lane.b32.xlu1 %v1518_v3, %s1437_s27  ;;  %163 = vrot.lane.b32.xlu0 %v1505_v1, %s1437_s27 }
  0x3f   :  { %189 = vrot.lane.b32.xlu1 %v1526_v4, %s1438_s28  ;;  %187 = vrot.lane.b32.xlu0 %v1510_v2, %s1438_s28 }
  0x43   :  { %193 = vrot.lane.b32.xlu1 %v1518_v3, %s1438_s28  ;;  %191 = vrot.lane.b32.xlu0 %v1505_v1, %s1438_s28 }
  0x47   :  { %217 = vrot.lane.b32.xlu1 %v1526_v4, %s1439_s29  ;;  %215 = vrot.lane.b32.xlu0 %v1510_v2, %s1439_s29 }
  0x4b   :  { %221 = vrot.lane.b32.xlu1 %v1518_v3, %s1439_s29  ;;  %219 = vrot.lane.b32.xlu0 %v1505_v1, %s1439_s29 }
  0x4f   :  { %245 = vrot.lane.b32.xlu1 %v1526_v4, %s1440_s30  ;;  %243 = vrot.lane.b32.xlu0 %v1510_v2, %s1440_s30 }
  0x53   :  { %249 = vrot.lane.b32.xlu1 %v1518_v3, %s1440_s30  ;;  %247 = vrot.lane.b32.xlu0 %v1505_v1, %s1440_s30 }
  0x57   :  { %273 = vrot.lane.b32.xlu1 %v1526_v4, %s1441_s10  ;;  %271 = vrot.lane.b32.xlu0 %v1510_v2, %s1441_s10 }
  0x5b   :  { %277 = vrot.lane.b32.xlu1 %v1518_v3, %s1441_s10  ;;  %275 = vrot.lane.b32.xlu0 %v1505_v1, %s1441_s10 }
  0x5f   :  { %302 = vperm.xlu0 %1284, %v299_v5   ;;  %339 = vperm.xlu1 %1285, %v331_v8  }
  0x63   :  { %989 = vperm.xlu0 %1284, %v981_v6   ;;  %334 = vperm.xlu1 %1285, %v330_v9  }
  0x91   :  { %v79_v10 = vpop.permute.xlu1 %78  ;;  %v75_v11 = vpop.permute.xlu0 %74 }
  0x95   :  { %v81_v12 = vpop.permute.xlu1 %80  ;;  %v104_v13 = vpop.permute.xlu0 %103 }
  0x96   :  { %v85_v36 = vsel %vm84_vm0, %v79_v10, %v81_v12  ;;  %v88_v41 = vsel %vm84_vm0, %v81_v12, %v75_v11  ;;  %v145_v12 = vld [vmem:[#allocation2 + $0x20] sm:$0xff] }
  0x99   :  { %v106_v14 = vpop.permute.xlu1 %105  ;;  %v77_v15 = vpop.permute.xlu0 %76 }
  0x9a   :  { %v86_v37 = vsel %vm84_vm0, %v77_v15, %v79_v10  ;;  %v87_v38 = vsel %vm84_vm0, %v75_v11, %v77_v15  ;;  %v114_v49 = vsel %vm111_vm1, %v104_v13, %v106_v14  ;;  %v1662_v15 = vshrl.u32 %v82_v28, 7 }
  0x9b   :  { %v95_v45 = vcombine.low %v88_v41, %v87_v38  ;;  %v96_v46 = vcombine.low %v86_v37, %v85_v36  ;;  %v1443_v28 = vmov 839922192  }
  0x9c   :  { %v305_v37 = vunpack.c.l.s4 %v1443_v28 }
  0x9d   :  { %v110_v16 = vpop.permute.xlu1 %109  ;;  %v108_v17 = vpop.permute.xlu0 %107  ;;  %v99_v61 = vmul.f32 %v95_v45, %v89_v51  ;;  %v100_v62 = vmul.f32 %v96_v46, %v90_v52  ;;  %v202_v51 = vld [vmem:[#allocation2 + $0x58] sm:$0xff] }
  0x9e   :  { %v115_v42 = vsel %vm111_vm1, %v110_v16, %v104_v13  ;;  %v112_v43 = vsel %vm111_vm1, %v108_v17, %v110_v16  ;;  %v113_v44 = vsel %vm111_vm1, %v106_v14, %v108_v17  ;;  %v146_v13 = vld [vmem:[#allocation2 + $0x28] sm:$0xff] }
  0x9f   :  { %v123_v54 = vcombine.low %v115_v42, %v114_v49  ;;  %v124_v55 = vcombine.low %v113_v44, %v112_v43  ;;  %v101_v16 = vadd.f32 %v99_v61, %v66_v53  ;;  %v102_v17 = vadd.f32 %v100_v62, %v67_v50  ;;  %v201_v50 = vld [vmem:[#allocation2 + $0x50] sm:$0xff] }
  0xa1   :  { %v134_v18 = vpop.permute.xlu1 %133  ;;  %v132_v19 = vpop.permute.xlu0 %131  ;;  %v127_v8 = vmul.f32 %v123_v54, %v117_v56  ;;  %v128_v9 = vmul.f32 %v124_v55, %v118_v57 }
  0xa2   :  { %v142_v1 = vsel %vm139_vm2, %v132_v19, %v134_v18 }
  0xa3   :  { %v129_v38 = vadd.f32 %v127_v8, %v101_v16  ;;  %v130_v39 = vadd.f32 %v128_v9, %v102_v17  ;;  %v258_v8 = vld [vmem:[#allocation2 + $0x78] sm:$0xff] }
  0xa5   :  { %v138_v20 = vpop.permute.xlu1 %137  ;;  %v136_v21 = vpop.permute.xlu0 %135 }
  0xa6   :  { %v143_v58 = vsel %vm139_vm2, %v138_v20, %v132_v19  ;;  %v140_v59 = vsel %vm139_vm2, %v136_v21, %v138_v20  ;;  %v141_v60 = vsel %vm139_vm2, %v134_v18, %v136_v21 }
  0xa7   :  { %v151_v10 = vcombine.low %v143_v58, %v142_v1  ;;  %v152_v11 = vcombine.low %v141_v60, %v140_v59  ;;  %v229_v58 = vld [vmem:[#allocation2 + $0x60] sm:$0xff]  ;;  %v230_v59 = vld [vmem:[#allocation2 + $0x68] sm:$0xff] }
  0xa9   :  { %v162_v22 = vpop.permute.xlu1 %161  ;;  %v160_v23 = vpop.permute.xlu0 %159  ;;  %v155_v40 = vmul.f32 %v151_v10, %v145_v12  ;;  %v156_v41 = vmul.f32 %v152_v11, %v146_v13  ;;  %v285_v13 = vld [vmem:[#allocation2 + $0x80] sm:$0xff] }
  0xaa   :  { %v170_v14 = vsel %vm167_vm3, %v160_v23, %v162_v22 }
  0xab   :  { %v157_v54 = vadd.f32 %v155_v40, %v129_v38  ;;  %v158_v55 = vadd.f32 %v156_v41, %v130_v39 }
  0xad   :  { %v166_v24 = vpop.permute.xlu1 %165  ;;  %v164_v25 = vpop.permute.xlu0 %163 }
  0xae   :  { %v171_v2 = vsel %vm167_vm3, %v166_v24, %v160_v23  ;;  %v168_v5 = vsel %vm167_vm3, %v164_v25, %v166_v24  ;;  %v169_v6 = vsel %vm167_vm3, %v162_v22, %v164_v25  ;;  %v173_v24 = vld [vmem:[#allocation2 + $0x30] sm:$0xff]  ;;  %v174_v25 = vld [vmem:[#allocation2 + $0x38] sm:$0xff] }
  0xaf   :  { %v179_v18 = vcombine.low %v171_v2, %v170_v14  ;;  %v180_v19 = vcombine.low %v169_v6, %v168_v5  ;;  %v257_v6 = vld [vmem:[#allocation2 + $0x70] sm:$0xff]  ;;  %v286_v14 = vld [vmem:[#allocation2 + $0x88] sm:$0xff] }
  0xb1   :  { %v1598_v26 = vpop.permute.xlu1 %189  ;;  %v1600_v27 = vpop.permute.xlu0 %187  ;;  %v183_v44 = vmul.f32 %v179_v18, %v173_v24  ;;  %v184_v45 = vmul.f32 %v180_v19, %v174_v25 }
  0xb2   :  { %v198_v42 = vsel %vm195_vm4, %v1600_v27, %v1598_v26 }
  0xb3   :  { %v185_v2 = vadd.f32 %v183_v44, %v157_v54  ;;  %v186_v5 = vadd.f32 %v184_v45, %v158_v55 }
  0xb5   :  { %v1602_v29 = vpop.permute.xlu1 %193  ;;  %v1604_v30 = vpop.permute.xlu0 %191 }
  0xb6   :  { %v199_v36 = vsel %vm195_vm4, %v1602_v29, %v1600_v27  ;;  %v196_v22 = vsel %vm195_vm4, %v1604_v30, %v1602_v29  ;;  %v197_v23 = vsel %vm195_vm4, %v1598_v26, %v1604_v30 }
  0xb7   :  { %v207_v46 = vcombine.low %v198_v42, %v197_v23  ;;  %v208_v49 = vcombine.low %v196_v22, %v199_v36 }
  0xb9   :  { %v1608_v32 = vpop.permute.xlu1 %217  ;;  %v1610_v33 = vpop.permute.xlu0 %215  ;;  %v211_v62 = vmul.f32 %v207_v46, %v201_v50 }
  0xba   :  { %v226_v52 = vsel %vm223_vm5, %v1610_v33, %v1608_v32 }
  0xbb   :  { %v213_v16 = vadd.f32 %v211_v62, %v185_v2 }
  0xbd   :  { %v1613_v34 = vpop.permute.xlu1 %221  ;;  %v1615_v35 = vpop.permute.xlu0 %219 }
  0xbe   :  { %v227_v29 = vsel %vm223_vm5, %v1613_v34, %v1610_v33  ;;  %v224_v30 = vsel %vm223_vm5, %v1615_v35, %v1613_v34  ;;  %v225_v43 = vsel %vm223_vm5, %v1608_v32, %v1615_v35 }
  0xbf   :  { %v235_v56 = vcombine.low %v226_v52, %v225_v43  ;;  %v236_v57 = vcombine.low %v224_v30, %v227_v29  ;;  %v329_v52 = vld [vmem:[%s2100_s3 + $0x8] sm:$0xff] }
  0xc1   :  { %v1632_v47 = vpop.permute.xlu1 %245  ;;  %v1634_v48 = vpop.permute.xlu0 %243  ;;  %v239_v9 = vmul.f32 %v235_v56, %v229_v58  ;;  %v240_v10 = vmul.f32 %v236_v57, %v230_v59 }
  0xc2   :  { %v254_v32 = vsel %vm251_vm6, %v1634_v48, %v1632_v47 }
  0xc3   :  { %v241_v25 = vadd.f32 %v239_v9, %v213_v16 }
  0xc5   :  { %v250_v63 = vpop.permute.xlu1 %249  ;;  %v248_v0 = vpop.permute.xlu0 %247 }
  0xc6   :  { %v255_v34 = vsel %vm251_vm6, %v250_v63, %v1634_v48  ;;  %v252_v35 = vsel %vm251_vm6, %v248_v0, %v250_v63  ;;  %v253_v53 = vsel %vm251_vm6, %v1632_v47, %v248_v0  ;;  %v212_v63 = vmul.f32 %v208_v49, %v202_v51  ;;  %v328_v51 = vld [vmem:[%s2100_s3] sm:$0xff] }
  0xc7   :  { %v263_v0 = vcombine.low %v254_v32, %v253_v53  ;;  %v264_v1 = vcombine.low %v252_v35, %v255_v34  ;;  %v306_v48 = vunpack.c.0.s8 %v305_v37 }
  0xc8   :  { %v214_v17 = vadd.f32 %v212_v63, %v186_v5 }
  0xc9   :  { %v274_v20 = vpop.permute.xlu1 %273  ;;  %v272_v21 = vpop.permute.xlu0 %271  ;;  %v267_v18 = vmul.f32 %v263_v0, %v257_v6  ;;  %v268_v19 = vmul.f32 %v264_v1, %v258_v8  ;;  %v309_v24 = vsub.s32 %v306_v48, %v1662_v15 }
  0xca   :  { %v282_v47 = vsel %vm279_vm7, %v272_v21, %v274_v20  ;;  %v242_v36 = vadd.f32 %v240_v10, %v214_v17 }
  0xcb   :  { %v269_v38 = vadd.f32 %v267_v18, %v241_v25 }
  0xcc   :  { %v270_v28 = vadd.f32 %v268_v19, %v242_v36 }
  0xcd   :  { %v278_v26 = vpop.permute.xlu1 %277  ;;  %v276_v27 = vpop.permute.xlu0 %275 }
  0xce   :  { %v283_v33 = vsel %vm279_vm7, %v278_v26, %v272_v21  ;;  %v280_v60 = vsel %vm279_vm7, %v276_v27, %v278_v26  ;;  %v281_v61 = vsel %vm279_vm7, %v274_v20, %v276_v27 }
  0xcf   :  { %v291_v11 = vcombine.low %v282_v47, %v281_v61  ;;  %v292_v12 = vcombine.low %v280_v60, %v283_v33 }
  0xd1   :  { %v295_v22 = vmul.f32 %v291_v11, %v285_v13  ;;  %v296_v23 = vmul.f32 %v292_v12, %v286_v14 }
  0xd3   :  { %v298_v21 = vadd.f32 %v296_v23, %v270_v28  ;;  %v297_v37 = vadd.f32 %v295_v22, %v269_v38 }
  0xda   :  { %v303_v20 = vpop.permute.xlu0 %302  ;;  %v340_v34 = vpop.permute.xlu1 %339 }
  0xdb   :  { %v310_v39 = vrot.slane %v303_v20, %v309_v24 }
  0xdd   :  { %v312_v40 = vadd.f32 %v310_v39, %v297_v37  ;;  %v313_v41 = vadd.f32 %v310_v39, %v298_v21 }
  0xde   :  { %v335_v35 = vpop.permute.xlu1 %334 }
  0xdf   :  { %v1239_v42 = vmul.f32 -1.442695, %v312_v40  ;;  %v1240_v29 = vmul.f32 -1.442695, %v313_v41 }
  0xe1   :  { %1288 = vpow2.f32 %v1239_v42 }
  0xe2   :  { %1290 = vpow2.f32 %v1240_v29 }
  0xee   :  { %v1289_v30 = vpop.eup %1288 }
  0xef   :  { %v1291_v43 = vpop.eup %1290  ;;  %v320_v44 = vadd.f32 1.0, %v1289_v30 }
  0xf0   :  { %v321_v15 = vadd.f32 1.0, %v1291_v43 }
  0xf1   :  { %1292 = vrcp.f32 %v320_v44 }
  0xf2   :  { %1294 = vrcp.f32 %v321_v15 }
  0xfe   :  { %v1293_v45 = vpop.eup %1292 }
  0xff   :  { %v1295_v46 = vpop.eup %1294  ;;  %v326_v49 = vmul.f32 %v1293_v45, %v312_v40 }
 0x100   :  { %v327_v26 = vmul.f32 %v1295_v46, %v313_v41 }
 0x101   :  { %v344_v27 = vcombine.high %v326_v49, %v326_v49 }
 0x102   :  { %v345_v50 = vcombine.high %v327_v26, %v327_v26 }
 0x103   :  { %1241 = vmatprep.subr.msk.mxu0 %vm353_vm8, %v344_v27 }
 0x104   :  { %1245 = vmatprep.subr.msk.mxu1 %vm353_vm8, %v345_v50  ;;  %1242 = vmatpush1.msk.msra.mxu0 %vm353_vm8, %v326_v49  ;;  %v1855_v50 = vpop.permute.xlu0 %989 }
 0x105   :  { %1246 = vmatpush1.msk.msra.mxu1 %vm353_vm8, %v327_v26  ;;  %1243 = vmatmul.mubr.msk.f32.vlgmr.msra.gmra.mxu0 %vm346_vm9, %v328_v51 }
 0x106   :  { %1247 = vmatmul.mubr.msk.f32.vlgmr.msra.gmra.mxu1 %vm346_vm9, %v328_v51  ;;  %432 = vmatprep.mubr.f32.mxu0 %v1442_v7 }
 0x107   :  { %509 = vmatprep.mubr.f32.mxu1 %v1442_v7 }
 0x109   :  { %1244 = vmatmul.mubr.msk.f32.gmra.mxu0 %vm346_vm9, %v329_v52 }
 0x10a   :  { %1248 = vmatmul.mubr.msk.f32.gmra.mxu1 %vm346_vm9, %v329_v52  ;;  %1131 = vmatprep.mubr.f32.mxu0 %v1442_v7 }
 0x10b   :  { %1202 = vmatprep.mubr.f32.mxu1 %v1442_v7 }
 0x1c5   :  { %v428_v53 = vpop.f32.mrf.mxu0 }
 0x1c6   :  { %v429_v54 = vadd.f32 %v428_v53, %v335_v35  ;;  %v505_v55 = vpop.f32.mrf.mxu1  ;;  %v575_v53 = vld [vmem:[#allocation5 + $0x110] sm:$0xff] }
 0x1c7   :  { %v506_v56 = vadd.f32 %v505_v55, %v335_v35  ;;  %v430_v57 = vpop.f32.mrf.mxu0  ;;  %v614_v55 = vld [vmem:[#allocation5 + $0x8] sm:$0xff] }
 0x1c8   :  { %v1249_v58 = vmul.f32 -1.442695, %v429_v54  ;;  %v431_v59 = vadd.f32 %v430_v57, %v335_v35  ;;  %v507_v32 = vpop.f32.mrf.mxu1 }
 0x1c9   :  { %v1251_v33 = vmul.f32 -1.442695, %v506_v56  ;;  %v508_v60 = vadd.f32 %v507_v32, %v335_v35  ;;  %v434_v16 = vpop.f32.mrf.mxu0 }
 0x1ca   :  { %1296 = vpow2.f32 %v1249_v58  ;;  %v1250_v61 = vmul.f32 -1.442695, %v431_v59  ;;  %v435_v17 = vadd.f32 %v434_v16, %v340_v34  ;;  %v511_v18 = vpop.f32.mrf.mxu1  ;;  %v664_v16 = vld [vmem:[#allocation5 + $0x50] sm:$0xff] }
 0x1cb   :  { %1298 = vpow2.f32 %v1251_v33  ;;  %v1252_v62 = vmul.f32 -1.442695, %v508_v60  ;;  %v436_v19 = vpop.f32.mrf.mxu0  ;;  %v512_v24 = vadd.f32 %v511_v18, %v340_v34 }
 0x1cc   :  { %1300 = vpow2.f32 %v1250_v61  ;;  %v1253_v25 = vmul.f32 -1.442695, %v435_v17  ;;  %v437_v36 = vadd.f32 %v436_v19, %v340_v34  ;;  %v513_v22 = vpop.f32.mrf.mxu1 }
 0x1cd   :  { %1302 = vpow2.f32 %v1252_v62  ;;  %v1255_v23 = vmul.f32 -1.442695, %v512_v24  ;;  %v514_v38 = vadd.f32 %v513_v22, %v340_v34 }
 0x1ce   :  { %v1254_v28 = vmul.f32 -1.442695, %v437_v36 }
 0x1cf   :  { %v1256_v20 = vmul.f32 -1.442695, %v514_v38 }
 0x1d7   :  { %v1297_v63 = vpop.eup %1296 }
 0x1d8   :  { %v1299_v7 = vpop.eup %1298  ;;  %v540_v0 = vadd.f32 1.0, %v1297_v63  ;;  %v573_v63 = vld [vmem:[#allocation5 + $0x100] sm:$0xff] }
 0x1d9   :  { %v1301_v1 = vpop.eup %1300  ;;  %v542_v2 = vadd.f32 1.0, %v1299_v7  ;;  %v613_v7 = vld [vmem:[#allocation5] sm:$0xff] }
 0x1da   :  { %1304 = vrcp.f32 %v540_v0  ;;  %v541_v5 = vadd.f32 1.0, %v1301_v1  ;;  %v1303_v6 = vpop.eup %1302  ;;  %v980_v0 = vld [vmem:[%s2103_s6] sm:$0xff] }
 0x1db   :  { %1306 = vrcp.f32 %v542_v2  ;;  %v543_v8 = vadd.f32 1.0, %v1303_v6  ;;  %v1057_v1 = vld [vmem:[%s2105_s8] sm:$0xf] }
 0x1dc   :  { %1308 = vrcp.f32 %v541_v5 }
 0x1dd   :  { %1310 = vrcp.f32 %v543_v8 }
 0x1de   :  { %1312 = vpow2.f32 %v1253_v25 }
 0x1df   :  { %1314 = vpow2.f32 %v1255_v23 }
 0x1e0   :  { %1316 = vpow2.f32 %v1254_v28 }
 0x1e1   :  { %1318 = vpow2.f32 %v1256_v20 }
 0x1e7   :  { %v1305_v47 = vpop.eup %1304 }
 0x1e8   :  { %v1727_v48 = vmul.f32 %v1305_v47, %v429_v54  ;;  %v1307_v9 = vpop.eup %1306  ;;  %v574_v54 = vld [vmem:[#allocation5 + $0x108] sm:$0xff] }
 0x1e9   :  { %v1733_v10 = vmul.f32 %v1307_v9, %v506_v56  ;;  %v1309_v11 = vpop.eup %1308  ;;  %v615_v56 = vld [vmem:[#allocation5 + $0x10] sm:$0xff] }
 0x1ea   :  { %931 = vrot.lane.b32.xlu1 %v1727_v48, %s1441_s10  ;;  %589 = vrot.lane.b32.xlu0 %v1727_v48, %s1435_s26  ;;  %v1739_v12 = vmul.f32 %v1309_v11, %v431_v59  ;;  %v1311_v13 = vpop.eup %1310 }
 0x1eb   :  { %v1745_v14 = vmul.f32 %v1311_v13, %v508_v60  ;;  %v1313_v21 = vpop.eup %1312  ;;  %v583_v59 = vmul.f32 %v575_v53, %v1733_v10  ;;  %v663_v13 = vld [vmem:[#allocation5 + $0x48] sm:$0xff] }
 0x1ec   :  { %v1315_v37 = vpop.eup %1314  ;;  %v544_v39 = vadd.f32 1.0, %v1313_v21  ;;  %v582_v60 = vmul.f32 %v574_v54, %v1739_v12 }
 0x1ed   :  { %v1317_v40 = vpop.eup %1316  ;;  %v546_v41 = vadd.f32 1.0, %v1315_v37 }
 0x1ee   :  { %939 = vrot.lane.b32.xlu1 %v1733_v10, %s1441_s10  ;;  %597 = vrot.lane.b32.xlu0 %v1733_v10, %s1435_s26  ;;  %1320 = vrcp.f32 %v544_v39  ;;  %v545_v42 = vadd.f32 1.0, %v1317_v40  ;;  %v1319_v29 = vpop.eup %1318 }
 0x1ef   :  { %1322 = vrcp.f32 %v546_v41  ;;  %v547_v30 = vadd.f32 1.0, %v1319_v29 }
 0x1f0   :  { %1324 = vrcp.f32 %v545_v42 }
 0x1f1   :  { %1326 = vrcp.f32 %v547_v30 }
 0x1f2   :  { %593 = vrot.lane.b32.xlu1 %v1739_v12, %s1435_s26  ;;  %637 = vrot.lane.b32.xlu0 %v1727_v48, %s1430_s13 }
 0x1f6   :  { %601 = vrot.lane.b32.xlu1 %v1745_v14, %s1435_s26  ;;  %645 = vrot.lane.b32.xlu0 %v1733_v10, %s1430_s13 }
 0x1fa   :  { %641 = vrot.lane.b32.xlu1 %v1739_v12, %s1430_s13  ;;  %686 = vrot.lane.b32.xlu0 %v1727_v48, %s1436_s5 }
 0x1fb   :  { %v1321_v43 = vpop.eup %1320 }
 0x1fc   :  { %v1323_v44 = vpop.eup %1322  ;;  %v1795_v15 = vmul.f32 %v1321_v43, %v435_v17 }
 0x1fd   :  { %v1325_v45 = vpop.eup %1324  ;;  %v1801_v46 = vmul.f32 %v1323_v44, %v512_v24  ;;  %v576_v24 = vld [vmem:[#allocation5 + $0x118] sm:$0xff]  ;;  %v712_v44 = vld [vmem:[#allocation5 + $0x88] sm:$0xff] }
 0x1fe   :  { %649 = vrot.lane.b32.xlu1 %v1745_v14, %s1430_s13  ;;  %694 = vrot.lane.b32.xlu0 %v1733_v10, %s1436_s5  ;;  %v1803_v49 = vmul.f32 %v1325_v45, %v437_v36  ;;  %v1327_v26 = vpop.eup %1326  ;;  %v584_v20 = vmul.f32 %v576_v24, %v1745_v14  ;;  %v713_v45 = vld [vmem:[#allocation5 + $0x90] sm:$0xff] }
 0x1ff   :  { %v1809_v27 = vmul.f32 %v1327_v26, %v514_v38  ;;  %v665_v38 = vld [vmem:[#allocation5 + $0x58] sm:$0xff] }
 0x202   :  { %690 = vrot.lane.b32.xlu1 %v1739_v12, %s1436_s5  ;;  %735 = vrot.lane.b32.xlu0 %v1727_v48, %s1437_s27 }
 0x206   :  { %698 = vrot.lane.b32.xlu1 %v1745_v14, %s1436_s5  ;;  %743 = vrot.lane.b32.xlu0 %v1733_v10, %s1437_s27 }
 0x20a   :  { %739 = vrot.lane.b32.xlu1 %v1739_v12, %s1437_s27  ;;  %784 = vrot.lane.b32.xlu0 %v1727_v48, %s1438_s28 }
 0x20e   :  { %747 = vrot.lane.b32.xlu1 %v1745_v14, %s1437_s27  ;;  %792 = vrot.lane.b32.xlu0 %v1733_v10, %s1438_s28 }
 0x212   :  { %788 = vrot.lane.b32.xlu1 %v1739_v12, %s1438_s28  ;;  %833 = vrot.lane.b32.xlu0 %v1727_v48, %s1439_s29 }
 0x216   :  { %796 = vrot.lane.b32.xlu1 %v1745_v14, %s1438_s28  ;;  %841 = vrot.lane.b32.xlu0 %v1733_v10, %s1439_s29 }
 0x21a   :  { %837 = vrot.lane.b32.xlu1 %v1739_v12, %s1439_s29  ;;  %882 = vrot.lane.b32.xlu0 %v1727_v48, %s1440_s30 }
 0x21e   :  { %845 = vrot.lane.b32.xlu1 %v1745_v14, %s1439_s29  ;;  %890 = vrot.lane.b32.xlu0 %v1733_v10, %s1440_s30  ;;  %v581_v10 = vmul.f32 %v573_v63, %v1727_v48  ;;  %v662_v48 = vld [vmem:[#allocation5 + $0x40] sm:$0xff] }
 0x222   :  { %886 = vrot.lane.b32.xlu1 %v1739_v12, %s1440_s30  ;;  %935 = vrot.lane.b32.xlu0 %v1739_v12, %s1441_s10  ;;  %v616_v12 = vld [vmem:[#allocation5 + $0x18] sm:$0xff] }
 0x226   :  { %894 = vrot.lane.b32.xlu1 %v1745_v14, %s1440_s30  ;;  %591 = vrot.lane.b32.xlu0 %v1795_v15, %s1435_s26 }
 0x22a   :  { %595 = vrot.lane.b32.xlu1 %v1803_v49, %s1435_s26  ;;  %599 = vrot.lane.b32.xlu0 %v1801_v46, %s1435_s26 }
 0x22e   :  { %603 = vrot.lane.b32.xlu1 %v1809_v27, %s1435_s26  ;;  %639 = vrot.lane.b32.xlu0 %v1795_v15, %s1430_s13 }
 0x232   :  { %643 = vrot.lane.b32.xlu1 %v1803_v49, %s1430_s13  ;;  %647 = vrot.lane.b32.xlu0 %v1801_v46, %s1430_s13 }
 0x236   :  { %651 = vrot.lane.b32.xlu1 %v1809_v27, %s1430_s13  ;;  %688 = vrot.lane.b32.xlu0 %v1795_v15, %s1436_s5 }
 0x23a   :  { %692 = vrot.lane.b32.xlu1 %v1803_v49, %s1436_s5  ;;  %696 = vrot.lane.b32.xlu0 %v1801_v46, %s1436_s5 }
 0x23e   :  { %700 = vrot.lane.b32.xlu1 %v1809_v27, %s1436_s5  ;;  %737 = vrot.lane.b32.xlu0 %v1795_v15, %s1437_s27 }
 0x242   :  { %741 = vrot.lane.b32.xlu1 %v1803_v49, %s1437_s27  ;;  %745 = vrot.lane.b32.xlu0 %v1801_v46, %s1437_s27 }
 0x246   :  { %749 = vrot.lane.b32.xlu1 %v1809_v27, %s1437_s27  ;;  %786 = vrot.lane.b32.xlu0 %v1795_v15, %s1438_s28 }
 0x24a   :  { %790 = vrot.lane.b32.xlu1 %v1803_v49, %s1438_s28  ;;  %794 = vrot.lane.b32.xlu0 %v1801_v46, %s1438_s28 }
 0x24e   :  { %798 = vrot.lane.b32.xlu1 %v1809_v27, %s1438_s28  ;;  %835 = vrot.lane.b32.xlu0 %v1795_v15, %s1439_s29 }
 0x252   :  { %839 = vrot.lane.b32.xlu1 %v1803_v49, %s1439_s29  ;;  %843 = vrot.lane.b32.xlu0 %v1801_v46, %s1439_s29 }
 0x256   :  { %847 = vrot.lane.b32.xlu1 %v1809_v27, %s1439_s29  ;;  %884 = vrot.lane.b32.xlu0 %v1795_v15, %s1440_s30 }
 0x25a   :  { %888 = vrot.lane.b32.xlu1 %v1803_v49, %s1440_s30  ;;  %892 = vrot.lane.b32.xlu0 %v1801_v46, %s1440_s30 }
 0x25c   :  { %v1861_v51 = vpop.permute.xlu1 %931  ;;  %v590_v52 = vpop.permute.xlu0 %589 }
 0x25e   :  { %896 = vrot.lane.b32.xlu1 %v1809_v27, %s1440_s30  ;;  %933 = vrot.lane.b32.xlu0 %v1795_v15, %s1441_s10 }
 0x260   :  { %v1867_v34 = vpop.permute.xlu1 %939  ;;  %v598_v35 = vpop.permute.xlu0 %597 }
 0x262   :  { %937 = vrot.lane.b32.xlu1 %v1803_v49, %s1441_s10  ;;  %941 = vrot.lane.b32.xlu0 %v1801_v46, %s1441_s10 }
 0x264   :  { %v594_v57 = vpop.permute.xlu1 %593  ;;  %v638_v58 = vpop.permute.xlu0 %637 }
 0x265   :  { %v607_v32 = vsel %vm84_vm0, %v594_v57, %v598_v35  ;;  %v609_v33 = vsel %vm84_vm0, %v590_v52, %v594_v57  ;;  %v711_v57 = vld [vmem:[#allocation5 + $0x80] sm:$0xff] }
 0x266   :  { %v622_v61 = vmul.f32 %v614_v55, %v609_v33  ;;  %v623_v62 = vmul.f32 %v615_v56, %v607_v32  ;;  %945 = vrot.lane.b32.xlu1 %v1809_v27, %s1441_s10  ;;  %943 = vrot.lane.b32.xlu0 %v1745_v14, %s1441_s10 }
 0x268   :  { %v630_v2 = vadd.f32 %v622_v61, %v582_v60  ;;  %v631_v5 = vadd.f32 %v623_v62, %v583_v59  ;;  %v602_v6 = vpop.permute.xlu1 %601  ;;  %v646_v8 = vpop.permute.xlu0 %645  ;;  %v714_v59 = vld [vmem:[#allocation5 + $0x98] sm:$0xff] }
 0x269   :  { %v605_v47 = vsel %vm84_vm0, %v598_v35, %v602_v6  ;;  %v611_v9 = vsel %vm84_vm0, %v602_v6, %v590_v52 }
 0x26a   :  { %v621_v11 = vmul.f32 %v613_v7, %v611_v9  ;;  %984 = vperm.xlu1 %1285, %v980_v0   ;;  %1060 = vperm.xlu0 %1284, %v1057_v1   ;;  %v624_v22 = vmul.f32 %v616_v12, %v605_v47  ;;  %v761_v0 = vld [vmem:[#allocation5 + $0xc8] sm:$0xff]  ;;  %v762_v1 = vld [vmem:[#allocation5 + $0xd0] sm:$0xff]  ;;  %v760_v12 = vld [vmem:[#allocation5 + $0xc0] sm:$0xff] }
 0x26c   :  { %v629_v17 = vadd.f32 %v621_v11, %v581_v10  ;;  %v642_v18 = vpop.permute.xlu1 %641  ;;  %v687_v19 = vpop.permute.xlu0 %686  ;;  %v632_v29 = vadd.f32 %v624_v22, %v584_v20 }
 0x26d   :  { %v655_v25 = vsel %vm111_vm1, %v642_v18, %v646_v8  ;;  %v657_v36 = vsel %vm111_vm1, %v638_v58, %v642_v18 }
 0x26e   :  { %v671_v23 = vmul.f32 %v663_v13, %v657_v36  ;;  %v672_v28 = vmul.f32 %v664_v16, %v655_v25  ;;  %v763_v13 = vld [vmem:[#allocation5 + $0xd8] sm:$0xff] }
 0x270   :  { %v679_v21 = vadd.f32 %v671_v23, %v630_v2  ;;  %v680_v37 = vadd.f32 %v672_v28, %v631_v5  ;;  %v650_v39 = vpop.permute.xlu1 %649  ;;  %v695_v40 = vpop.permute.xlu0 %694  ;;  %v809_v23 = vld [vmem:[#allocation5 + $0x140] sm:$0xff]  ;;  %v810_v28 = vld [vmem:[#allocation5 + $0x148] sm:$0xff] }
 0x271   :  { %v653_v41 = vsel %vm111_vm1, %v646_v8, %v650_v39  ;;  %v659_v42 = vsel %vm111_vm1, %v650_v39, %v638_v58 }
 0x272   :  { %v670_v30 = vmul.f32 %v662_v48, %v659_v42  ;;  %v673_v43 = vmul.f32 %v665_v38, %v653_v41  ;;  %v811_v42 = vld [vmem:[#allocation5 + $0x150] sm:$0xff] }
 0x274   :  { %v678_v26 = vadd.f32 %v670_v30, %v629_v17  ;;  %v681_v52 = vadd.f32 %v673_v43, %v632_v29  ;;  %v691_v35 = vpop.permute.xlu1 %690  ;;  %v736_v53 = vpop.permute.xlu0 %735  ;;  %v812_v29 = vld [vmem:[#allocation5 + $0x158] sm:$0xff] }
 0x275   :  { %v704_v14 = vsel %vm139_vm2, %v691_v35, %v695_v40  ;;  %v706_v54 = vsel %vm139_vm2, %v687_v19, %v691_v35 }
 0x276   :  { %v720_v55 = vmul.f32 %v712_v44, %v706_v54  ;;  %v721_v56 = vmul.f32 %v713_v45, %v704_v14  ;;  %v858_v14 = vld [vmem:[#allocation5 + $0x180] sm:$0xff]  ;;  %v859_v54 = vld [vmem:[#allocation5 + $0x188] sm:$0xff] }
 0x278   :  { %v728_v58 = vadd.f32 %v720_v55, %v679_v21  ;;  %v729_v32 = vadd.f32 %v721_v56, %v680_v37  ;;  %v699_v33 = vpop.permute.xlu1 %698  ;;  %v744_v60 = vpop.permute.xlu0 %743 }
 0x279   :  { %v702_v61 = vsel %vm139_vm2, %v695_v40, %v699_v33  ;;  %v708_v62 = vsel %vm139_vm2, %v699_v33, %v687_v19 }
 0x27a   :  { %v719_v63 = vmul.f32 %v711_v57, %v708_v62  ;;  %v722_v7 = vmul.f32 %v714_v59, %v702_v61  ;;  %v860_v61 = vld [vmem:[#allocation5 + $0x190] sm:$0xff]  ;;  %v861_v62 = vld [vmem:[#allocation5 + $0x198] sm:$0xff] }
 0x27c   :  { %v727_v2 = vadd.f32 %v719_v63, %v678_v26  ;;  %v730_v5 = vadd.f32 %v722_v7, %v681_v52  ;;  %v740_v6 = vpop.permute.xlu1 %739  ;;  %v785_v8 = vpop.permute.xlu0 %784 }
 0x27d   :  { %v753_v47 = vsel %vm167_vm3, %v740_v6, %v744_v60  ;;  %v755_v9 = vsel %vm167_vm3, %v736_v53, %v740_v6 }
 0x27e   :  { %v769_v10 = vmul.f32 %v761_v0, %v755_v9  ;;  %v770_v11 = vmul.f32 %v762_v1, %v753_v47  ;;  %v907_v47 = vld [vmem:[#allocation5 + $0x1c0] sm:$0xff]  ;;  %v908_v9 = vld [vmem:[#allocation5 + $0x1c8] sm:$0xff] }
 0x280   :  { %v777_v16 = vadd.f32 %v769_v10, %v728_v58  ;;  %v778_v17 = vadd.f32 %v770_v11, %v729_v32  ;;  %v748_v18 = vpop.permute.xlu1 %747  ;;  %v793_v19 = vpop.permute.xlu0 %792 }
 0x281   :  { %v751_v24 = vsel %vm167_vm3, %v744_v60, %v748_v18  ;;  %v757_v25 = vsel %vm167_vm3, %v748_v18, %v736_v53  ;;  %v956_v18 = vld [vmem:[#allocation5 + $0x200] sm:$0xff] }
 0x282   :  { %v768_v36 = vmul.f32 %v760_v12, %v757_v25  ;;  %v771_v22 = vmul.f32 %v763_v13, %v751_v24 }
 0x284   :  { %v776_v48 = vadd.f32 %v768_v36, %v727_v2  ;;  %v779_v38 = vadd.f32 %v771_v22, %v730_v5  ;;  %v789_v20 = vpop.permute.xlu1 %788  ;;  %v834_v21 = vpop.permute.xlu0 %833 }
 0x285   :  { %v802_v37 = vsel %vm195_vm4, %v789_v20, %v793_v19  ;;  %v804_v39 = vsel %vm195_vm4, %v785_v8, %v789_v20 }
 0x286   :  { %v817_v40 = vmul.f32 %v809_v23, %v804_v39  ;;  %v818_v41 = vmul.f32 %v810_v28, %v802_v37  ;;  %v909_v23 = vld [vmem:[#allocation5 + $0x1d0] sm:$0xff]  ;;  %v910_v28 = vld [vmem:[#allocation5 + $0x1d8] sm:$0xff] }
 0x288   :  { %v825_v30 = vadd.f32 %v817_v40, %v776_v48  ;;  %v826_v43 = vadd.f32 %v818_v41, %v777_v16  ;;  %v797_v44 = vpop.permute.xlu1 %796  ;;  %v842_v45 = vpop.permute.xlu0 %841 }
 0x289   :  { %v800_v26 = vsel %vm195_vm4, %v793_v19, %v797_v44  ;;  %v806_v52 = vsel %vm195_vm4, %v797_v44, %v785_v8  ;;  %v957_v19 = vld [vmem:[#allocation5 + $0x208] sm:$0xff] }
 0x28a   :  { %v819_v35 = vmul.f32 %v811_v42, %v800_v26  ;;  %v820_v53 = vmul.f32 %v812_v29, %v806_v52 }
 0x28c   :  { %v827_v55 = vadd.f32 %v819_v35, %v778_v17  ;;  %v828_v56 = vadd.f32 %v820_v53, %v779_v38  ;;  %v838_v57 = vpop.permute.xlu1 %837  ;;  %v883_v59 = vpop.permute.xlu0 %882 }
 0x28d   :  { %v851_v58 = vsel %vm223_vm5, %v838_v57, %v842_v45  ;;  %v853_v32 = vsel %vm223_vm5, %v834_v21, %v838_v57 }
 0x28e   :  { %v866_v33 = vmul.f32 %v858_v14, %v853_v32  ;;  %v867_v60 = vmul.f32 %v859_v54, %v851_v58 }
 0x290   :  { %v874_v63 = vadd.f32 %v866_v33, %v825_v30  ;;  %v875_v7 = vadd.f32 %v867_v60, %v826_v43  ;;  %v846_v0 = vpop.permute.xlu1 %845  ;;  %v891_v1 = vpop.permute.xlu0 %890 }
 0x291   :  { %v849_v2 = vsel %vm223_vm5, %v842_v45, %v846_v0  ;;  %v855_v5 = vsel %vm223_vm5, %v846_v0, %v834_v21  ;;  %v618_v0 = vld [vmem:[#allocation5 + $0x28] sm:$0xff] }
 0x292   :  { %v868_v6 = vmul.f32 %v860_v61, %v849_v2  ;;  %v869_v8 = vmul.f32 %v861_v62, %v855_v5  ;;  %v578_v2 = vld [vmem:[#allocation5 + $0x128] sm:$0xff]  ;;  %v619_v5 = vld [vmem:[#allocation5 + $0x30] sm:$0xff] }
 0x294   :  { %v876_v10 = vadd.f32 %v868_v6, %v827_v55  ;;  %v877_v11 = vadd.f32 %v869_v8, %v828_v56  ;;  %v887_v12 = vpop.permute.xlu1 %886  ;;  %v936_v13 = vpop.permute.xlu0 %935  ;;  %v617_v8 = vld [vmem:[#allocation5 + $0x20] sm:$0xff] }
 0x295   :  { %v900_v16 = vsel %vm251_vm6, %v887_v12, %v891_v1  ;;  %v902_v17 = vsel %vm251_vm6, %v883_v59, %v887_v12  ;;  %v949_v24 = vsel %vm279_vm7, %v936_v13, %v1867_v34  ;;  %v951_v25 = vsel %vm279_vm7, %v1861_v51, %v936_v13  ;;  %v667_v12 = vld [vmem:[#allocation5 + $0x68] sm:$0xff] }
 0x296   :  { %v915_v36 = vmul.f32 %v907_v47, %v902_v17  ;;  %v916_v22 = vmul.f32 %v908_v9, %v900_v16  ;;  %v964_v20 = vmul.f32 %v956_v18, %v951_v25  ;;  %v965_v21 = vmul.f32 %v957_v19, %v949_v24  ;;  %v579_v19 = vld [vmem:[#allocation5 + $0x130] sm:$0xff]  ;;  %v577_v24 = vld [vmem:[#allocation5 + $0x120] sm:$0xff]  ;;  %v580_v25 = vld [vmem:[#allocation5 + $0x138] sm:$0xff] }
 0x297   :  { %v586_v18 = vmul.f32 %v578_v2, %v1803_v49  ;;  %v716_v49 = vld [vmem:[#allocation5 + $0xa8] sm:$0xff] }
 0x298   :  { %v923_v48 = vadd.f32 %v915_v36, %v874_v63  ;;  %v924_v38 = vadd.f32 %v916_v22, %v875_v7  ;;  %v895_v37 = vpop.permute.xlu1 %894  ;;  %v592_v39 = vpop.permute.xlu0 %591 }
 0x299   :  { %v898_v40 = vsel %vm251_vm6, %v891_v1, %v895_v37  ;;  %v904_v41 = vsel %vm251_vm6, %v895_v37, %v883_v59  ;;  %v669_v37 = vld [vmem:[#allocation5 + $0x78] sm:$0xff] }
 0x29a   :  { %v1949_v42 = vadd.f32 %v964_v20, %v923_v48  ;;  %v1951_v29 = vadd.f32 %v965_v21, %v924_v38  ;;  %v917_v30 = vmul.f32 %v909_v23, %v898_v40  ;;  %v918_v43 = vmul.f32 %v910_v28, %v904_v41  ;;  %v668_v23 = vld [vmem:[#allocation5 + $0x70] sm:$0xff]  ;;  %v666_v48 = vld [vmem:[#allocation5 + $0x60] sm:$0xff] }
 0x29c   :  { %v1953_v44 = vadd.f32 %v917_v30, %v876_v10  ;;  %v1955_v45 = vadd.f32 %v918_v43, %v877_v11  ;;  %v596_v26 = vpop.permute.xlu1 %595  ;;  %v600_v52 = vpop.permute.xlu0 %599  ;;  %v620_v10 = vld [vmem:[#allocation5 + $0x38] sm:$0xff]  ;;  %v587_v30 = vmul.f32 %v579_v19, %v1801_v46  ;;  %v585_v43 = vmul.f32 %v577_v24, %v1795_v15 }
 0x29d   :  { %v610_v1 = vsel %vm84_vm0, %v592_v39, %v596_v26  ;;  %v608_v6 = vsel %vm84_vm0, %v596_v26, %v600_v52  ;;  %v588_v26 = vmul.f32 %v580_v25, %v1809_v27  ;;  %v718_v27 = vld [vmem:[#allocation5 + $0xb8] sm:$0xff]  ;;  %v766_v25 = vld [vmem:[#allocation5 + $0xf0] sm:$0xff] }
 0x29e   :  { %v626_v9 = vmul.f32 %v618_v0, %v610_v1  ;;  %v627_v36 = vmul.f32 %v619_v5, %v608_v6  ;;  %v717_v0 = vld [vmem:[#allocation5 + $0xb0] sm:$0xff] }
 0x2a0   :  { %v604_v35 = vpop.permute.xlu1 %603  ;;  %v640_v53 = vpop.permute.xlu0 %639  ;;  %v634_v41 = vadd.f32 %v626_v9, %v586_v18  ;;  %v635_v2 = vadd.f32 %v627_v36, %v587_v30 }
 0x2a1   :  { %v612_v47 = vsel %vm84_vm0, %v604_v35, %v592_v39  ;;  %v606_v11 = vsel %vm84_vm0, %v600_v52, %v604_v35 }
 0x2a2   :  { %v625_v22 = vmul.f32 %v617_v8, %v612_v47  ;;  %v628_v20 = vmul.f32 %v620_v10, %v606_v11  ;;  %v765_v11 = vld [vmem:[#allocation5 + $0xe8] sm:$0xff] }
 0x2a4   :  { %v644_v14 = vpop.permute.xlu1 %643  ;;  %v648_v54 = vpop.permute.xlu0 %647  ;;  %v633_v6 = vadd.f32 %v625_v22, %v585_v43  ;;  %v636_v15 = vadd.f32 %v628_v20, %v588_v26 }
 0x2a5   :  { %v658_v13 = vsel %vm111_vm1, %v640_v53, %v644_v14  ;;  %v656_v28 = vsel %vm111_vm1, %v644_v14, %v648_v54 }
 0x2a6   :  { %v675_v21 = vmul.f32 %v667_v12, %v658_v13  ;;  %v764_v12 = vld [vmem:[#allocation5 + $0xe0] sm:$0xff] }
 0x2a8   :  { %v652_v55 = vpop.permute.xlu1 %651  ;;  %v689_v56 = vpop.permute.xlu0 %688  ;;  %v683_v8 = vadd.f32 %v675_v21, %v634_v41  ;;  %v814_v21 = vld [vmem:[#allocation5 + $0x168] sm:$0xff] }
 0x2a9   :  { %v660_v38 = vsel %vm111_vm1, %v652_v55, %v640_v53  ;;  %v654_v39 = vsel %vm111_vm1, %v648_v54, %v652_v55  ;;  %v676_v53 = vmul.f32 %v668_v23, %v656_v28  ;;  %v715_v55 = vld [vmem:[#allocation5 + $0xa0] sm:$0xff] }
 0x2aa   :  { %v674_v14 = vmul.f32 %v666_v48, %v660_v38  ;;  %v677_v5 = vmul.f32 %v669_v37, %v654_v39  ;;  %v813_v23 = vld [vmem:[#allocation5 + $0x160] sm:$0xff]  ;;  %v767_v48 = vld [vmem:[#allocation5 + $0xf8] sm:$0xff] }
 0x2ab   :  { %v684_v19 = vadd.f32 %v676_v53, %v635_v2  ;;  %v815_v53 = vld [vmem:[#allocation5 + $0x170] sm:$0xff]  ;;  %v911_v2 = vld [vmem:[#allocation5 + $0x1e0] sm:$0xff] }
 0x2ac   :  { %v693_v57 = vpop.permute.xlu1 %692  ;;  %v697_v59 = vpop.permute.xlu0 %696  ;;  %v682_v24 = vadd.f32 %v674_v14, %v633_v6  ;;  %v863_v14 = vld [vmem:[#allocation5 + $0x1a8] sm:$0xff] }
 0x2ad   :  { %v707_v40 = vsel %vm139_vm2, %v689_v56, %v693_v57  ;;  %v705_v54 = vsel %vm139_vm2, %v693_v57, %v697_v59 }
 0x2ae   :  { %v724_v46 = vmul.f32 %v716_v49, %v707_v40  ;;  %v725_v9 = vmul.f32 %v717_v0, %v705_v54  ;;  %v862_v40 = vld [vmem:[#allocation5 + $0x1a0] sm:$0xff] }
 0x2b0   :  { %v701_v58 = vpop.permute.xlu1 %700  ;;  %v1957_v32 = vpop.permute.xlu0 %737  ;;  %v732_v36 = vadd.f32 %v724_v46, %v683_v8  ;;  %v733_v37 = vadd.f32 %v725_v9, %v684_v19 }
 0x2b1   :  { %v709_v1 = vsel %vm139_vm2, %v701_v58, %v689_v56  ;;  %v703_v47 = vsel %vm139_vm2, %v697_v59, %v701_v58  ;;  %v685_v58 = vadd.f32 %v677_v5, %v636_v15  ;;  %v912_v15 = vld [vmem:[#allocation5 + $0x1e8] sm:$0xff] }
 0x2b2   :  { %v723_v10 = vmul.f32 %v715_v55, %v709_v1  ;;  %v726_v22 = vmul.f32 %v718_v27, %v703_v47  ;;  %v864_v47 = vld [vmem:[#allocation5 + $0x1b0] sm:$0xff] }
 0x2b4   :  { %v1959_v33 = vpop.permute.xlu1 %741  ;;  %v1961_v60 = vpop.permute.xlu0 %745  ;;  %v731_v39 = vadd.f32 %v723_v10, %v682_v24  ;;  %v734_v54 = vadd.f32 %v726_v22, %v685_v58  ;;  %v913_v58 = vld [vmem:[#allocation5 + $0x1f0] sm:$0xff] }
 0x2b5   :  { %v756_v57 = vsel %vm167_vm3, %v1957_v32, %v1959_v33  ;;  %v754_v59 = vsel %vm167_vm3, %v1959_v33, %v1961_v60 }
 0x2b6   :  { %v774_v49 = vmul.f32 %v766_v25, %v754_v59 }
 0x2b8   :  { %v1963_v61 = vpop.permute.xlu1 %749  ;;  %v1965_v62 = vpop.permute.xlu0 %786 }
 0x2b9   :  { %v758_v56 = vsel %vm167_vm3, %v1963_v61, %v1957_v32  ;;  %v773_v32 = vmul.f32 %v765_v11, %v756_v57  ;;  %v752_v38 = vsel %vm167_vm3, %v1961_v60, %v1963_v61  ;;  %v816_v60 = vld [vmem:[#allocation5 + $0x178] sm:$0xff]  ;;  %v782_v11 = vadd.f32 %v774_v49, %v733_v37 }
 0x2ba   :  { %v772_v20 = vmul.f32 %v764_v12, %v758_v56  ;;  %v775_v55 = vmul.f32 %v767_v48, %v752_v38  ;;  %v865_v12 = vld [vmem:[#allocation5 + $0x1b8] sm:$0xff]  ;;  %v961_v48 = vld [vmem:[#allocation5 + $0x228] sm:$0xff] }
 0x2bb   :  { %v781_v46 = vadd.f32 %v773_v32, %v732_v36  ;;  %v960_v32 = vld [vmem:[#allocation5 + $0x220] sm:$0xff] }
 0x2bc   :  { %v1967_v63 = vpop.permute.xlu1 %790  ;;  %v1969_v7 = vpop.permute.xlu0 %794  ;;  %v780_v6 = vadd.f32 %v772_v20, %v731_v39  ;;  %v783_v24 = vadd.f32 %v775_v55, %v734_v54 }
 0x2bd   :  { %v805_v28 = vsel %vm195_vm4, %v1965_v62, %v1967_v63  ;;  %v803_v33 = vsel %vm195_vm4, %v1967_v63, %v1969_v7 }
 0x2be   :  { %v821_v26 = vmul.f32 %v813_v23, %v805_v28  ;;  %v822_v1 = vmul.f32 %v814_v21, %v803_v33 }
 0x2c0   :  { %v1981_v16 = vpop.permute.xlu1 %798  ;;  %v1983_v17 = vpop.permute.xlu0 %835  ;;  %v829_v57 = vadd.f32 %v821_v26, %v780_v6  ;;  %v830_v25 = vadd.f32 %v822_v1, %v781_v46 }
 0x2c1   :  { %v801_v61 = vsel %vm195_vm4, %v1969_v7, %v1981_v16  ;;  %v807_v63 = vsel %vm195_vm4, %v1981_v16, %v1965_v62 }
 0x2c2   :  { %v823_v62 = vmul.f32 %v815_v53, %v801_v61  ;;  %v824_v16 = vmul.f32 %v816_v60, %v807_v63  ;;  %v962_v53 = vld [vmem:[#allocation5 + $0x230] sm:$0xff]  ;;  %v963_v60 = vld [vmem:[#allocation5 + $0x238] sm:$0xff] }
 0x2c4   :  { %v840_v52 = vpop.permute.xlu1 %839  ;;  %v1997_v35 = vpop.permute.xlu0 %843  ;;  %v831_v38 = vadd.f32 %v823_v62, %v782_v11  ;;  %v832_v20 = vadd.f32 %v824_v16, %v783_v24 }
 0x2c5   :  { %v854_v41 = vsel %vm223_vm5, %v1983_v17, %v840_v52  ;;  %v852_v0 = vsel %vm223_vm5, %v840_v52, %v1997_v35 }
 0x2c6   :  { %v870_v7 = vmul.f32 %v862_v40, %v854_v41  ;;  %v871_v27 = vmul.f32 %v863_v14, %v852_v0 }
 0x2c8   :  { %v848_v13 = vpop.permute.xlu1 %847  ;;  %v885_v18 = vpop.permute.xlu0 %884  ;;  %v878_v22 = vadd.f32 %v870_v7, %v829_v57  ;;  %v879_v21 = vadd.f32 %v871_v27, %v830_v25  ;;  %v958_v27 = vld [vmem:[#allocation5 + $0x210] sm:$0xff] }
 0x2c9   :  { %v850_v52 = vsel %vm223_vm5, %v1997_v35, %v848_v13  ;;  %v856_v56 = vsel %vm223_vm5, %v848_v13, %v1983_v17  ;;  %v914_v35 = vld [vmem:[#allocation5 + $0x1f8] sm:$0xff] }
 0x2ca   :  { %v872_v23 = vmul.f32 %v864_v47, %v850_v52  ;;  %v873_v17 = vmul.f32 %v865_v12, %v856_v56  ;;  %v959_v47 = vld [vmem:[#allocation5 + $0x218] sm:$0xff] }
 0x2cc   :  { %v889_v30 = vpop.permute.xlu1 %888  ;;  %v893_v43 = vpop.permute.xlu0 %892  ;;  %v880_v26 = vadd.f32 %v872_v23, %v831_v38  ;;  %v881_v61 = vadd.f32 %v873_v17, %v832_v20 }
 0x2cd   :  { %v903_v5 = vsel %vm251_vm6, %v885_v18, %v889_v30  ;;  %v901_v8 = vsel %vm251_vm6, %v889_v30, %v893_v43 }
 0x2ce   :  { %v919_v19 = vmul.f32 %v911_v2, %v903_v5  ;;  %v920_v59 = vmul.f32 %v912_v15, %v901_v8 }
 0x2d0   :  { %v897_v9 = vpop.permute.xlu1 %896  ;;  %v934_v10 = vpop.permute.xlu0 %933  ;;  %v927_v37 = vadd.f32 %v919_v19, %v878_v22  ;;  %v928_v41 = vadd.f32 %v920_v59, %v879_v21 }
 0x2d1   :  { %v899_v36 = vsel %vm251_vm6, %v893_v43, %v897_v9  ;;  %v905_v28 = vsel %vm251_vm6, %v897_v9, %v885_v18 }
 0x2d2   :  { %v921_v39 = vmul.f32 %v913_v58, %v899_v36  ;;  %v922_v30 = vmul.f32 %v914_v35, %v905_v28 }
 0x2d4   :  { %v938_v13 = vpop.permute.xlu1 %937  ;;  %v942_v33 = vpop.permute.xlu0 %941  ;;  %v929_v54 = vadd.f32 %v921_v39, %v880_v26  ;;  %v930_v2 = vadd.f32 %v922_v30, %v881_v61 }
 0x2d5   :  { %v952_v49 = vsel %vm279_vm7, %v934_v10, %v938_v13  ;;  %v950_v40 = vsel %vm279_vm7, %v938_v13, %v942_v33 }
 0x2d6   :  { %v968_v43 = vmul.f32 %v960_v32, %v952_v49  ;;  %v969_v18 = vmul.f32 %v961_v48, %v950_v40 }
 0x2d8   :  { %v976_v63 = vadd.f32 %v968_v43, %v927_v37  ;;  %v977_v14 = vadd.f32 %v969_v18, %v928_v41  ;;  %v946_v0 = vpop.permute.xlu1 %945  ;;  %v944_v7 = vpop.permute.xlu0 %943 }
 0x2d9   :  { %v948_v55 = vsel %vm279_vm7, %v942_v33, %v946_v0  ;;  %v954_v1 = vsel %vm279_vm7, %v946_v0, %v934_v10  ;;  %v947_v52 = vsel %vm279_vm7, %v1867_v34, %v944_v7  ;;  %v953_v9 = vsel %vm279_vm7, %v944_v7, %v1861_v51 }
 0x2da   :  { %v2066_v5 = vadd.f32 %v1855_v50, %v976_v63  ;;  %v970_v46 = vmul.f32 %v962_v53, %v948_v55  ;;  %v971_v6 = vmul.f32 %v963_v60, %v954_v1  ;;  %v997_v15 = vadd.f32 %v1855_v50, %v977_v14 }
 0x2db   :  { %v966_v56 = vmul.f32 %v958_v27, %v947_v52  ;;  %v967_v19 = vmul.f32 %v959_v47, %v953_v9  ;;  %v1360_v47 = vld [vmem:[%s2097_s0] sm:$0xff] }
 0x2dc   :  { %v1261_v8 = vmul.f32 -1.442695, %v2066_v5  ;;  %v978_v62 = vadd.f32 %v970_v46, %v929_v54  ;;  %v979_v16 = vadd.f32 %v971_v6, %v930_v2  ;;  %v1262_v10 = vmul.f32 -1.442695, %v997_v15  ;;  %v1056_v2 = vld [vmem:[%s2104_s7] sm:$0xf] }
 0x2dd   :  { %v974_v25 = vadd.f32 %v966_v56, %v1953_v44  ;;  %v975_v34 = vadd.f32 %v967_v19, %v1955_v45  ;;  %s1444_s7 = smov [#allocation7]  }
 0x2de   :  { %1328 = vpow2.f32 %v1261_v8  ;;  %v998_v11 = vadd.f32 %v1855_v50, %v978_v62  ;;  %v999_v57 = vadd.f32 %v1855_v50, %v979_v16  ;;  %s1229_s25 = sshll.u32 %s1444_s7, 4  ;;  %s1230_s25 = int_to_ptr.vmem [resolvable:$true] %s1229_s25 }
 0x2df   :  { %1330 = vpow2.f32 %v1262_v10  ;;  %s1402_s27 = scalar_lea.vmem %s1230_s25, 256  ;;  %p1407_p11 = scmp.lt.s32.totalorder %s1230_s25, %s1230_s25 }
 0x2e0   :  { %v1263_v12 = vmul.f32 -1.442695, %v998_v11  ;;  %v1264_v24 = vmul.f32 -1.442695, %v999_v57  ;;  %p1403_p10 = scmp.ne.s32.totalorder %s1230_s25, %s1402_s27  ;;  %p1408_p12 = scmp.lt.s32.totalorder %s1402_s27, %s1402_s27 }
 0x2e2   :  { %1332 = vpow2.f32 %v1263_v12  ;;  %p1409_p13 = por %p1408_p12, %p1407_p11 }
 0x2e3   :  { %1334 = vpow2.f32 %v1264_v24 }
 0x2e4   :  { %p1410_p0 = pnand %p1409_p13, %p1403_p10 }
 0x2e5   :  { %v985_v59 = vpop.permute.xlu1 %984  ;;  %v1061_v46 = vpop.permute.xlu0 %1060 }
 0x2e6   :  { %v992_v31 = vadd.f32 %v985_v59, %v1949_v42  ;;  %v993_v51 = vadd.f32 %v985_v59, %v1951_v29  ;;  %v994_v58 = vadd.f32 %v985_v59, %v974_v25  ;;  %v995_v36 = vadd.f32 %v985_v59, %v975_v34 }
 0x2e8   :  { %v1257_v22 = vmul.f32 -1.442695, %v992_v31  ;;  %v1258_v50 = vmul.f32 -1.442695, %v993_v51  ;;  %v1259_v23 = vmul.f32 -1.442695, %v994_v58 }
 0x2e9   :  { %v1260_v35 = vmul.f32 -1.442695, %v995_v36 }
 0x2ea   :  { %1336 = vpow2.f32 %v1257_v22 }
 0x2eb   :  { %v1329_v28 = vpop.eup %1328  ;;  %1338 = vpow2.f32 %v1258_v50 }
 0x2ec   :  { %v1331_v32 = vpop.eup %1330  ;;  %v1028_v48 = vadd.f32 1.0, %v1329_v28  ;;  %1340 = vpow2.f32 %v1259_v23 }
 0x2ed   :  { %1342 = vpow2.f32 %v1260_v35  ;;  %v1029_v44 = vadd.f32 1.0, %v1331_v32 }
 0x2ee   :  { %1344 = vrcp.f32 %v1028_v48 }
 0x2ef   :  { %v1333_v45 = vpop.eup %1332  ;;  %1346 = vrcp.f32 %v1029_v44 }
 0x2f0   :  { %v1335_v42 = vpop.eup %1334  ;;  %v1030_v38 = vadd.f32 1.0, %v1333_v45 }
 0x2f1   :  { %v1031_v29 = vadd.f32 1.0, %v1335_v42 }
 0x2f2   :  { %1348 = vrcp.f32 %v1030_v38 }
 0x2f3   :  { %1350 = vrcp.f32 %v1031_v29 }
 0x2f7   :  { %v1337_v20 = vpop.eup %1336 }
 0x2f8   :  { %v1339_v21 = vpop.eup %1338  ;;  %v1024_v17 = vadd.f32 1.0, %v1337_v20 }
 0x2f9   :  { %v1341_v13 = vpop.eup %1340  ;;  %v1025_v33 = vadd.f32 1.0, %v1339_v21 }
 0x2fa   :  { %v1343_v37 = vpop.eup %1342  ;;  %v1026_v39 = vadd.f32 1.0, %v1341_v13  ;;  %1352 = vrcp.f32 %v1024_v17 }
 0x2fb   :  { %v1345_v49 = vpop.eup %1344  ;;  %v1027_v40 = vadd.f32 1.0, %v1343_v37  ;;  %1354 = vrcp.f32 %v1025_v33 }
 0x2fc   :  { %v1347_v41 = vpop.eup %1346  ;;  %1356 = vrcp.f32 %v1026_v39  ;;  %v1052_v30 = vmul.f32 %v1345_v49, %v2066_v5 }
 0x2fd   :  { %1358 = vrcp.f32 %v1027_v40  ;;  %v1053_v43 = vmul.f32 %v1347_v41, %v997_v15 }
 0x2ff   :  { %v1349_v18 = vpop.eup %1348  ;;  %1095 = vmatprep.subr.mxu0 %v1053_v43 }
 0x300   :  { %v1351_v26 = vpop.eup %1350  ;;  %1096 = vmatpush1.msra.mxu0 %v1052_v30  ;;  %v1054_v53 = vmul.f32 %v1349_v18, %v998_v11  ;;  %v1361_v11 = vld [vmem:[%s2097_s0 + $0x8] sm:$0xff] }
 0x301   :  { %v1055_v60 = vmul.f32 %v1351_v26, %v999_v57 }
 0x303   :  { %1166 = vmatprep.subr.mxu1 %v1055_v60 }
 0x304   :  { %1167 = vmatpush1.msra.mxu1 %v1054_v53 }
 0x307   :  { %v1353_v61 = vpop.eup %1352 }
 0x308   :  { %v1355_v63 = vpop.eup %1354  ;;  %v1048_v14 = vmul.f32 %v1353_v61, %v992_v31 }
 0x309   :  { %v1357_v0 = vpop.eup %1356  ;;  %v1049_v54 = vmul.f32 %v1355_v63, %v993_v51 }
 0x30a   :  { %v1359_v55 = vpop.eup %1358  ;;  %v1050_v1 = vmul.f32 %v1357_v0, %v994_v58 }
 0x30b   :  { %1097 = vmatprep.subr.mxu0 %v1049_v54  ;;  %v1051_v5 = vmul.f32 %v1359_v55, %v995_v36 }
 0x30c   :  { %1098 = vmatpush1.msra.mxu0 %v1048_v14 }
 0x30d   :  { %1168 = vmatprep.subr.mxu1 %v1051_v5  ;;  %1265 = vmatmul.mubr.msk.f32.vlgmr.msra.gmra.mxu0 %vm1063_vm10, %v1056_v2 }
 0x30e   :  { %1169 = vmatpush1.msra.mxu1 %v1050_v1 }
 0x30f   :  { %1266 = vmatmul.mubr.msk.f32.vlgmr.msra.gmra.mxu1 %vm1063_vm10, %v1056_v2 }
 0x3cd   :  { %v1133_v6 = vpop.f32.mrf.mxu0 }
 0x3ce   :  { %v1134_v7 = vadd.f32 %v1133_v6, %v1061_v46 }
 0x3cf   :  { %v1204_v15 = vpop.f32.mrf.mxu1  ;;  %v1135_v8 = vpop.f32.mrf.mxu0 }
 0x3d0   :  { %v1205_v62 = vadd.f32 %v1204_v15, %v1061_v46  ;;  %v1136_v16 = vadd.f32 %v1135_v8, %v1061_v46  ;;  %v1209_v52 = vadd.f32 %v1360_v47, %v1134_v7 }
 0x3d1   :  { %v1206_v27 = vpop.f32.mrf.mxu1 }
 0x3d2   :  { %v1210_v9 = vadd.f32 %v1136_v16, %v1526_v4  ;;  %v1207_v10 = vadd.f32 %v1206_v27, %v1061_v46  ;;  %v1211_v57 = vadd.f32 %v1361_v11, %v1205_v62 }
 0x3d4   :  { %v1217_v12 = vcombine.low %v1209_v52, %v1210_v9  ;;  %v1212_v56 = vadd.f32 %v1207_v10, %v1518_v3 }
 0x3d6   :  { %1221 = vst [vmem:[#allocation7] sm:$0xff] %v1217_v12  ;;  %v1218_v19 = vcombine.low %v1211_v57, %v1212_v56 }
 0x3d8   :  { %1222 = vst [vmem:[#allocation7 + $0x8] sm:$0xff] %v1218_v19 }
 0x3d9   :  { %1413 = shalt.err (!%p1410_p0)
}
 0x3da   :  { %1232 = dma.vmem_to_hbm [thread:$0]  %s1230_s25, 256, %s2106_s9, [#allocation4]  }
 0x3db   :  { %1426 = dma.done.wait [#allocation4], 256  }
 0x3dc   :  { %1427 = vsyncadd [#allocation4], 4294967040 }
 0x3dd   :  { %1236 = vsyncpa [#allocation3], 1 }
 0x3de   :  { %1237 = vsyncpa [#allocation6], 1 }
 0x3df   :  { %1238 = vsyncpa [#allocation4], 1 }

</bundles_post_ra>
